<compile_context>
chip_gen: v6e
topology: v6e:2x2x1
jax: 0.10.0
libtpu: 0.0.40
codegen_flags: <defaults>
</compile_context>

<pallas_src>
import functools

import jax
import jax.numpy as jnp
from jax.experimental import pallas as pl
from jax.experimental.pallas import tpu as pltpu

LEAKY_SLOPE = 0.01   # nn.LeakyReLU default
BN_EPS = 1e-5        # nn.BatchNorm1d default


def _leaky_relu(x):
    # slope < 1 so max(x, slope*x) == LeakyReLU(x); single VPU max.
    return jnp.maximum(x, LEAKY_SLOPE * x)


def mlp_kernel(x_ref,
               w1_ref, b1_ref,
               w2_ref, b2_ref, g2_ref, be2_ref,
               w3_ref, b3_ref, g3_ref, be3_ref,
               out_ref):
    batch = x_ref.shape[0]
    inv_b = 1.0 / batch  # static

    # ---- Layer 1: Linear + LeakyReLU (no BN for i == 0) ----
    h = jnp.dot(x_ref[...].astype(jnp.bfloat16), w1_ref[...],
                preferred_element_type=jnp.float32) + b1_ref[...]
    h = _leaky_relu(h)

    # ---- Layer 2: Linear + BatchNorm1d (train stats, single pass) + LeakyReLU ----
    h = jnp.dot(h.astype(jnp.bfloat16), w2_ref[...],
                preferred_element_type=jnp.float32) + b2_ref[...]
    mean = jnp.sum(h, axis=0, keepdims=True) * inv_b
    var = jnp.sum(h * h, axis=0, keepdims=True) * inv_b - mean * mean  # biased
    scale = jax.lax.rsqrt(var + BN_EPS) * g2_ref[...]      # (1, h2)
    shift = be2_ref[...] - mean * scale                    # (1, h2)
    h = _leaky_relu(h * scale + shift)

    # ---- Layer 3: Linear + BatchNorm1d (train stats, single pass) + LeakyReLU ----
    h = jnp.dot(h.astype(jnp.bfloat16), w3_ref[...],
                preferred_element_type=jnp.float32) + b3_ref[...]
    mean = jnp.sum(h, axis=0, keepdims=True) * inv_b
    var = jnp.sum(h * h, axis=0, keepdims=True) * inv_b - mean * mean
    scale = jax.lax.rsqrt(var + BN_EPS) * g3_ref[...]
    shift = be3_ref[...] - mean * scale
    h = _leaky_relu(h * scale + shift)

    out_ref[...] = h.astype(out_ref.dtype)


@jax.jit
def mlp_layer_forward(x, params):
    (w1, b1, w2, b2, g2, be2, w3, b3, g3, be3) = params
    batch, in_size = x.shape
    h1, h2, h3 = w1.shape[1], w2.shape[1], w3.shape[1]

    flops = 2 * batch * (in_size * h1 + h1 * h2 + h2 * h3) \
        + 8 * batch * (h1 + h2 + h3)           # bias/BN/activation elementwise
    transcendentals = h2 + h3                  # rsqrt per BN feature
    bytes_accessed = (
        x.size * x.dtype.itemsize
        + batch * h3 * 4                                        # output
        + (w1.size + w2.size + w3.size) * 2                     # bf16 weights
        + (b1.size + b2.size + b3.size
           + g2.size + be2.size + g3.size + be3.size) * 4)      # f32 vectors

    vmem_spec = pl.BlockSpec(memory_space=pltpu.MemorySpace.VMEM)
    return pl.pallas_call(
        mlp_kernel,
        out_shape=jax.ShapeDtypeStruct((batch, h3), jnp.float32),
        in_specs=[vmem_spec] * 11,
        out_specs=vmem_spec,
        cost_estimate=pl.CostEstimate(
            flops=flops,
            transcendentals=transcendentals,
            bytes_accessed=bytes_accessed),
    )(x, w1, b1, w2, b2, g2, be2, w3, b3, g3, be3)


def xavier_uniform(key, fan_in, fan_out):
    bound = (6.0 / (fan_in + fan_out)) ** 0.5
    return jax.random.uniform(key, (fan_in, fan_out), jnp.float32, -bound, bound)


def linear_bias(key, fan_in, fan_out):
    # PyTorch nn.Linear default bias init: U(-1/sqrt(fan_in), 1/sqrt(fan_in))
    bound = 1.0 / (fan_in ** 0.5)
    return jax.random.uniform(key, (1, fan_out), jnp.float32, -bound, bound)


def make_params(key, in_size, hidden_arch):
    h1, h2, h3 = hidden_arch
    keys = jax.random.split(key, 6)
    # Weights stored in bf16 (halves the dominant weight-DMA bytes).
    w1 = xavier_uniform(keys[0], in_size, h1).astype(jnp.bfloat16)
    b1 = linear_bias(keys[1], in_size, h1)
    w2 = xavier_uniform(keys[2], h1, h2).astype(jnp.bfloat16)
    b2 = linear_bias(keys[3], h1, h2)
    w3 = xavier_uniform(keys[4], h2, h3).astype(jnp.bfloat16)
    b3 = linear_bias(keys[5], h2, h3)
    # BatchNorm1d default init: weight (gamma) = 1, bias (beta) = 0
    g2, be2 = jnp.ones((1, h2), jnp.float32), jnp.zeros((1, h2), jnp.float32)
    g3, be3 = jnp.ones((1, h3), jnp.float32), jnp.zeros((1, h3), jnp.float32)
    return (w1, b1, w2, b2, g2, be2, w3, b3, g3, be3)


def mlp_reference(x, params):
    """Pure-JAX reference mirroring the kernel's bf16-weight precision."""
    (w1, b1, w2, b2, g2, be2, w3, b3, g3, be3) = params

    def dot(a, w):
        return jnp.dot(a.astype(jnp.bfloat16), w,
                       preferred_element_type=jnp.float32)

    h = _leaky_relu(dot(x, w1) + b1)
    h = dot(h, w2) + b2
    m, v = jnp.mean(h, 0, keepdims=True), jnp.var(h, 0, keepdims=True)
    h = _leaky_relu((h - m) * jax.lax.rsqrt(v + BN_EPS) * g2 + be2)
    h = dot(h, w3) + b3
    m, v = jnp.mean(h, 0, keepdims=True), jnp.var(h, 0, keepdims=True)
    h = _leaky_relu((h - m) * jax.lax.rsqrt(v + BN_EPS) * g3 + be3)
    return h


if __name__ == "__main__":
    key = jax.random.PRNGKey(0)
    k_x, k_p = jax.random.split(key)

    batch, in_size = 8, 32
    hidden_arch = [128, 512, 1024]

    x = jax.random.normal(k_x, (batch, in_size), jnp.float32)
    params = make_params(k_p, in_size, hidden_arch)

    out = mlp_layer_forward(x, params)
    out = jax.block_until_ready(out)

    ref = mlp_reference(x, params)
    assert out.shape == (batch, hidden_arch[-1])
    assert jnp.allclose(out, ref, atol=2e-3, rtol=2e-3), "mismatch vs JAX reference"

    print("KERNEL_OK")
</pallas_src>

<mosaic_0001>
module attributes {stable_mosaic.version = 11 : i64} {
  func.func @mlp_kernel(%arg0: memref<8x32xf32, #tpu.memory_space<vmem>>, %arg1: memref<32x128xbf16, #tpu.memory_space<vmem>>, %arg2: memref<1x128xf32, #tpu.memory_space<vmem>>, %arg3: memref<128x512xbf16, #tpu.memory_space<vmem>>, %arg4: memref<1x512xf32, #tpu.memory_space<vmem>>, %arg5: memref<1x512xf32, #tpu.memory_space<vmem>>, %arg6: memref<1x512xf32, #tpu.memory_space<vmem>>, %arg7: memref<512x1024xbf16, #tpu.memory_space<vmem>>, %arg8: memref<1x1024xf32, #tpu.memory_space<vmem>>, %arg9: memref<1x1024xf32, #tpu.memory_space<vmem>>, %arg10: memref<1x1024xf32, #tpu.memory_space<vmem>>, %arg11: memref<8x1024xf32, #tpu.memory_space<vmem>>) attributes {dimension_semantics = [], scalar_prefetch = 0 : i64, scratch_operands = 0 : i64, tpu.core_type = #tpu.core_type<tc>} {
    %c0 = arith.constant 0 : index
    %c0_0 = arith.constant 0 : index
    %0 = vector.load %arg0[%c0, %c0_0] : memref<8x32xf32, #tpu.memory_space<vmem>>, vector<8x32xf32>
    %1 = arith.truncf %0 : vector<8x32xf32> to vector<8x32xbf16>
    %c0_1 = arith.constant 0 : index
    %c0_2 = arith.constant 0 : index
    %2 = vector.load %arg1[%c0_1, %c0_2] : memref<32x128xbf16, #tpu.memory_space<vmem>>, vector<32x128xbf16>
    %cst = arith.constant dense<0.000000e+00> : vector<8x128xf32>
    %3 = tpu.matmul %1, %2, %cst {dimension_numbers = #tpu.dot_dimension_numbers<[1], [0], [0], [1], [0, 0, 1, 1], [], []>} : vector<8x32xbf16>, vector<32x128xbf16>, vector<8x128xf32> -> vector<8x128xf32>
    %c0_3 = arith.constant 0 : index
    %c0_4 = arith.constant 0 : index
    %4 = vector.load %arg2[%c0_3, %c0_4] : memref<1x128xf32, #tpu.memory_space<vmem>>, vector<1x128xf32>
    %5 = vector.broadcast %4 : vector<1x128xf32> to vector<8x128xf32>
    %6 = arith.addf %3, %5 : vector<8x128xf32>
    %cst_5 = arith.constant 0.00999999977 : f32
    %7 = vector.broadcast %cst_5 : f32 to vector<8x128xf32>
    %8 = arith.mulf %7, %6 : vector<8x128xf32>
    %9 = arith.maximumf %6, %8 : vector<8x128xf32>
    %10 = arith.truncf %9 : vector<8x128xf32> to vector<8x128xbf16>
    %c0_6 = arith.constant 0 : index
    %c0_7 = arith.constant 0 : index
    %11 = vector.load %arg3[%c0_6, %c0_7] : memref<128x512xbf16, #tpu.memory_space<vmem>>, vector<128x512xbf16>
    %cst_8 = arith.constant dense<0.000000e+00> : vector<8x512xf32>
    %12 = tpu.matmul %10, %11, %cst_8 {dimension_numbers = #tpu.dot_dimension_numbers<[1], [0], [0], [1], [0, 0, 1, 1], [], []>} : vector<8x128xbf16>, vector<128x512xbf16>, vector<8x512xf32> -> vector<8x512xf32>
    %c0_9 = arith.constant 0 : index
    %c0_10 = arith.constant 0 : index
    %13 = vector.load %arg4[%c0_9, %c0_10] : memref<1x512xf32, #tpu.memory_space<vmem>>, vector<1x512xf32>
    %14 = vector.broadcast %13 : vector<1x512xf32> to vector<8x512xf32>
    %15 = arith.addf %12, %14 : vector<8x512xf32>
    %cst_11 = arith.constant dense<0.000000e+00> : vector<512xf32>
    %16 = vector.multi_reduction <add>, %15, %cst_11 [0] : vector<8x512xf32> to vector<512xf32>
    %17 = vector.shape_cast %16 : vector<512xf32> to vector<1x512xf32>
    %cst_12 = arith.constant 1.250000e-01 : f32
    %18 = vector.broadcast %cst_12 : f32 to vector<1x512xf32>
    %19 = arith.mulf %17, %18 : vector<1x512xf32>
    %20 = arith.mulf %15, %15 : vector<8x512xf32>
    %cst_13 = arith.constant dense<0.000000e+00> : vector<512xf32>
    %21 = vector.multi_reduction <add>, %20, %cst_13 [0] : vector<8x512xf32> to vector<512xf32>
    %22 = vector.shape_cast %21 : vector<512xf32> to vector<1x512xf32>
    %cst_14 = arith.constant 1.250000e-01 : f32
    %23 = vector.broadcast %cst_14 : f32 to vector<1x512xf32>
    %24 = arith.mulf %22, %23 : vector<1x512xf32>
    %25 = arith.mulf %19, %19 : vector<1x512xf32>
    %26 = arith.subf %24, %25 : vector<1x512xf32>
    %cst_15 = arith.constant 9.99999974E-6 : f32
    %27 = vector.broadcast %cst_15 : f32 to vector<1x512xf32>
    %28 = arith.addf %26, %27 : vector<1x512xf32>
    %29 = math.rsqrt %28 : vector<1x512xf32>
    %c0_16 = arith.constant 0 : index
    %c0_17 = arith.constant 0 : index
    %30 = vector.load %arg5[%c0_16, %c0_17] : memref<1x512xf32, #tpu.memory_space<vmem>>, vector<1x512xf32>
    %31 = arith.mulf %29, %30 : vector<1x512xf32>
    %c0_18 = arith.constant 0 : index
    %c0_19 = arith.constant 0 : index
    %32 = vector.load %arg6[%c0_18, %c0_19] : memref<1x512xf32, #tpu.memory_space<vmem>>, vector<1x512xf32>
    %33 = arith.mulf %19, %31 : vector<1x512xf32>
    %34 = arith.subf %32, %33 : vector<1x512xf32>
    %35 = vector.broadcast %31 : vector<1x512xf32> to vector<8x512xf32>
    %36 = arith.mulf %15, %35 : vector<8x512xf32>
    %37 = vector.broadcast %34 : vector<1x512xf32> to vector<8x512xf32>
    %38 = arith.addf %36, %37 : vector<8x512xf32>
    %cst_20 = arith.constant 0.00999999977 : f32
    %39 = vector.broadcast %cst_20 : f32 to vector<8x512xf32>
    %40 = arith.mulf %39, %38 : vector<8x512xf32>
    %41 = arith.maximumf %38, %40 : vector<8x512xf32>
    %42 = arith.truncf %41 : vector<8x512xf32> to vector<8x512xbf16>
    %c0_21 = arith.constant 0 : index
    %c0_22 = arith.constant 0 : index
    %43 = vector.load %arg7[%c0_21, %c0_22] : memref<512x1024xbf16, #tpu.memory_space<vmem>>, vector<512x1024xbf16>
    %cst_23 = arith.constant dense<0.000000e+00> : vector<8x1024xf32>
    %44 = tpu.matmul %42, %43, %cst_23 {dimension_numbers = #tpu.dot_dimension_numbers<[1], [0], [0], [1], [0, 0, 1, 1], [], []>} : vector<8x512xbf16>, vector<512x1024xbf16>, vector<8x1024xf32> -> vector<8x1024xf32>
    %c0_24 = arith.constant 0 : index
    %c0_25 = arith.constant 0 : index
    %45 = vector.load %arg8[%c0_24, %c0_25] : memref<1x1024xf32, #tpu.memory_space<vmem>>, vector<1x1024xf32>
    %46 = vector.broadcast %45 : vector<1x1024xf32> to vector<8x1024xf32>
    %47 = arith.addf %44, %46 : vector<8x1024xf32>
    %cst_26 = arith.constant dense<0.000000e+00> : vector<1024xf32>
    %48 = vector.multi_reduction <add>, %47, %cst_26 [0] : vector<8x1024xf32> to vector<1024xf32>
    %49 = vector.shape_cast %48 : vector<1024xf32> to vector<1x1024xf32>
    %cst_27 = arith.constant 1.250000e-01 : f32
    %50 = vector.broadcast %cst_27 : f32 to vector<1x1024xf32>
    %51 = arith.mulf %49, %50 : vector<1x1024xf32>
    %52 = arith.mulf %47, %47 : vector<8x1024xf32>
    %cst_28 = arith.constant dense<0.000000e+00> : vector<1024xf32>
    %53 = vector.multi_reduction <add>, %52, %cst_28 [0] : vector<8x1024xf32> to vector<1024xf32>
    %54 = vector.shape_cast %53 : vector<1024xf32> to vector<1x1024xf32>
    %cst_29 = arith.constant 1.250000e-01 : f32
    %55 = vector.broadcast %cst_29 : f32 to vector<1x1024xf32>
    %56 = arith.mulf %54, %55 : vector<1x1024xf32>
    %57 = arith.mulf %51, %51 : vector<1x1024xf32>
    %58 = arith.subf %56, %57 : vector<1x1024xf32>
    %cst_30 = arith.constant 9.99999974E-6 : f32
    %59 = vector.broadcast %cst_30 : f32 to vector<1x1024xf32>
    %60 = arith.addf %58, %59 : vector<1x1024xf32>
    %61 = math.rsqrt %60 : vector<1x1024xf32>
    %c0_31 = arith.constant 0 : index
    %c0_32 = arith.constant 0 : index
    %62 = vector.load %arg9[%c0_31, %c0_32] : memref<1x1024xf32, #tpu.memory_space<vmem>>, vector<1x1024xf32>
    %63 = arith.mulf %61, %62 : vector<1x1024xf32>
    %c0_33 = arith.constant 0 : index
    %c0_34 = arith.constant 0 : index
    %64 = vector.load %arg10[%c0_33, %c0_34] : memref<1x1024xf32, #tpu.memory_space<vmem>>, vector<1x1024xf32>
    %65 = arith.mulf %51, %63 : vector<1x1024xf32>
    %66 = arith.subf %64, %65 : vector<1x1024xf32>
    %67 = vector.broadcast %63 : vector<1x1024xf32> to vector<8x1024xf32>
    %68 = arith.mulf %47, %67 : vector<8x1024xf32>
    %69 = vector.broadcast %66 : vector<1x1024xf32> to vector<8x1024xf32>
    %70 = arith.addf %68, %69 : vector<8x1024xf32>
    %cst_35 = arith.constant 0.00999999977 : f32
    %71 = vector.broadcast %cst_35 : f32 to vector<8x1024xf32>
    %72 = arith.mulf %71, %70 : vector<8x1024xf32>
    %73 = arith.maximumf %70, %72 : vector<8x1024xf32>
    %c0_36 = arith.constant 0 : index
    %c0_37 = arith.constant 0 : index
    %74 = vector.load %arg11[%c0_36, %c0_37] : memref<8x1024xf32, #tpu.memory_space<vmem>>, vector<8x1024xf32>
    tpu.vector_store %arg11[%c0_36, %c0_37], %73 {strides = array<i32>} : memref<8x1024xf32, #tpu.memory_space<vmem>>, vector<8x1024xf32>,
    return
  }
}

</mosaic_0001>

<bundles_post_ra>
// kernel: mlp_layer_forward.1
= control target key start
LH: loop header
LB: loop body
LE: loop exit
PB: predicated region body
PF: predicated region fallthrough
CT: control target
= control target key end

     0   :  { %16 = vsyncpa [#allocation3], 0  ;;  %s4029_s0 = inlined_call_operand.hbm [shape: f32[8,32], index: 0, kind: input, shape index: {}]   ;;  %s4030_s1 = inlined_call_operand.hbm [shape: bf16[32,128], index: 1, kind: input, shape index: {}]   ;;  %s4031_s2 = inlined_call_operand.hbm [shape: f32[1,128], index: 2, kind: input, shape index: {}]   ;;  %s4032_s3 = inlined_call_operand.hbm [shape: bf16[128,512], index: 3, kind: input, shape index: {}]   ;;  %s4033_s4 = inlined_call_operand.hbm [shape: f32[1,512], index: 4, kind: input, shape index: {}]   ;;  %s4034_s5 = inlined_call_operand.hbm [shape: f32[1,512], index: 5, kind: input, shape index: {}]   ;;  %s4035_s6 = inlined_call_operand.hbm [shape: f32[1,512], index: 6, kind: input, shape index: {}]   ;;  %s4036_s7 = inlined_call_operand.hbm [shape: bf16[512,1024], index: 7, kind: input, shape index: {}]   ;;  %s4037_s8 = inlined_call_operand.vmem [shape: f32[1,1024], index: 8, kind: input, shape index: {}]   ;;  %s4038_s9 = inlined_call_operand.vmem [shape: f32[1,1024], index: 9, kind: input, shape index: {}]   ;;  %s4039_s10 = inlined_call_operand.hbm [shape: f32[1,1024], index: 10, kind: input, shape index: {}]   ;;  %s4040_s11 = inlined_call_operand.hbm [shape: f32[8,1024], index: 11, kind: output, shape index: {}]  }
   0x1   :  { %17 = vsyncpa [#allocation6], 0 }
   0x2   :  { %18 = vsyncpa [#allocation9], 0 }
   0x3   :  { %19 = vsyncpa [#allocation12], 0 }
   0x4   :  { %20 = vsyncpa [#allocation15], 0 }
   0x5   :  { %21 = vsyncpa [#allocation4], 0  ;;  %s3629_s17 = smov [#allocation5]  }
   0x6   :  { %s37_s18 = sshll.u32 %s3629_s17, 4  ;;  %s38_s18 = int_to_ptr.vmem [resolvable:$true] %s37_s18 }
   0x7   :  { %s3425_s19 = scalar_lea.vmem %s38_s18, 256  ;;  %p3430_p1 = scmp.lt.s32.totalorder %s38_s18, %s38_s18 }
   0x8   :  { %p3426_p0 = scmp.ne.s32.totalorder %s38_s18, %s3425_s19  ;;  %p3431_p2 = scmp.lt.s32.totalorder %s3425_s19, %s3425_s19 }
   0xa   :  { %p3432_p3 = por %p3431_p2, %p3430_p1 }
   0xc   :  { %p3433_p4 = pnand %p3432_p3, %p3426_p0 }
   0xe   :  { %3436 = shalt.err (!%p3433_p4)
}
   0xf   :  { %s3630_s20 = smov 64   ;;  %s3631_s21 = smov 4  }
  0x10   :  { %43 = dma.hbm_to_vmem [thread:$0]  %s4030_s1, 256, %s38_s18, [#allocation6], %s3630_s20, %s3630_s20, %s3631_s21  }
  0x11   :  { %s3632_s24 = smov [#allocation8]  }
  0x12   :  { %s59_s25 = sshll.u32 %s3632_s24, 4  ;;  %s60_s25 = int_to_ptr.vmem [resolvable:$true] %s59_s25 }
  0x13   :  { %s3445_s26 = scalar_lea.vmem %s60_s25, 4096  ;;  %p3450_p6 = scmp.lt.s32.totalorder %s60_s25, %s60_s25 }
  0x14   :  { %p3446_p5 = scmp.ne.s32.totalorder %s60_s25, %s3445_s26  ;;  %p3451_p7 = scmp.lt.s32.totalorder %s3445_s26, %s3445_s26 }
  0x16   :  { %p3452_p8 = por %p3451_p7, %p3450_p6 }
  0x18   :  { %p3453_p9 = pnand %p3452_p8, %p3446_p5 }
  0x1a   :  { %3456 = shalt.err (!%p3453_p9)
}
  0x1b   :  { %s3633_s27 = smov 256   ;;  %s3634_s28 = smov 16  }
  0x1c   :  { %65 = dma.hbm_to_vmem [thread:$0]  %s4032_s3, 4096, %s60_s25, [#allocation9], %s3633_s27, %s3633_s27, %s3634_s28  }
  0x1d   :  { %s3635_s12 = smov [#allocation11]   ;;  %s3636_s14 = smov [#allocation14]  }
  0x1e   :  { %s82_s13 = sshll.u32 %s3635_s12, 4  ;;  %s101_s1 = sshll.u32 %s3636_s14, 4  ;;  %s83_s13 = int_to_ptr.vmem [resolvable:$true] %s82_s13  ;;  %s102_s1 = int_to_ptr.vmem [resolvable:$true] %s101_s1 }
  0x1f   :  { %s3465_s15 = scalar_lea.vmem %s83_s13, 64  ;;  %p3470_p11 = scmp.lt.s32.totalorder %s83_s13, %s83_s13 }
  0x20   :  { %p3466_p10 = scmp.ne.s32.totalorder %s83_s13, %s3465_s15  ;;  %p3471_p12 = scmp.lt.s32.totalorder %s3465_s15, %s3465_s15 }
  0x22   :  { %p3472_p13 = por %p3471_p12, %p3470_p11 }
  0x24   :  { %p3473_p0 = pnand %p3472_p13, %p3466_p10 }
  0x26   :  { %3476 = shalt.err (!%p3473_p0)
}
  0x27   :  { %85 = dma.hbm_to_vmem [thread:$0]  %s4034_s5, 64, %s83_s13, [#allocation12]  }
  0x28   :  { %s3485_s18 = scalar_lea.vmem %s102_s1, 32768  ;;  %p3490_p2 = scmp.lt.s32.totalorder %s102_s1, %s102_s1 }
  0x29   :  { %p3486_p1 = scmp.ne.s32.totalorder %s102_s1, %s3485_s18  ;;  %p3491_p3 = scmp.lt.s32.totalorder %s3485_s18, %s3485_s18 }
  0x2b   :  { %p3492_p4 = por %p3491_p3, %p3490_p2 }
  0x2d   :  { %p3493_p5 = pnand %p3492_p4, %p3486_p1 }
  0x2f   :  { %3496 = shalt.err (!%p3493_p5)
}
  0x30   :  { %s3637_s3 = smov 512   ;;  %s3638_s19 = smov 32  }
  0x31   :  { %107 = dma.hbm_to_vmem [thread:$0]  %s4036_s7, 32768, %s102_s1, [#allocation15], %s3637_s3, %s3637_s3, %s3638_s19  }
  0x32   :  { %s3639_s22 = smov [#allocation2]   ;;  %s3640_s24 = smov [#allocation7]  }
  0x33   :  { %s28_s23 = sshll.u32 %s3639_s22, 4  ;;  %s50_s25 = sshll.u32 %s3640_s24, 4  ;;  %s29_s23 = int_to_ptr.vmem [resolvable:$true] %s28_s23  ;;  %s51_s25 = int_to_ptr.vmem [resolvable:$true] %s50_s25 }
  0x34   :  { %s3505_s5 = scalar_lea.vmem %s29_s23, 128  ;;  %p3510_p7 = scmp.lt.s32.totalorder %s29_s23, %s29_s23 }
  0x35   :  { %p3506_p6 = scmp.ne.s32.totalorder %s29_s23, %s3505_s5  ;;  %p3511_p8 = scmp.lt.s32.totalorder %s3505_s5, %s3505_s5 }
  0x37   :  { %p3512_p9 = por %p3511_p8, %p3510_p7 }
  0x39   :  { %p3513_p10 = pnand %p3512_p9, %p3506_p6 }
  0x3b   :  { %3516 = shalt.err (!%p3513_p10)
}
  0x3c   :  { %31 = dma.hbm_to_vmem [thread:$0]  %s4029_s0, 128, %s29_s23, [#allocation3]  }
  0x3d   :  { %s3525_s28 = scalar_lea.vmem %s51_s25, 16  ;;  %s3529_s7 = scalar_lea.vmem %s51_s25, 32 }
  0x3e   :  { %p3526_p11 = scmp.ne.s32.totalorder %s51_s25, %s3525_s28  ;;  %p3530_p12 = scmp.lt.s32.totalorder %s51_s25, %s51_s25 }
  0x3f   :  { %p3531_p13 = scmp.lt.s32.totalorder %s3529_s7, %s3525_s28 }
  0x41   :  { %p3532_p0 = por %p3531_p13, %p3530_p12 }
  0x43   :  { %p3533_p1 = pnand %p3532_p0, %p3526_p11 }
  0x45   :  { %3536 = shalt.err (!%p3533_p1)
}
  0x46   :  { %53 = dma.hbm_to_vmem [thread:$0]  %s4031_s2, 16, %s51_s25, [#allocation6]  }
  0x47   :  { %s3641_s12 = smov [#allocation10]   ;;  %s3642_s14 = smov [#allocation13]  }
  0x48   :  { %s72_s13 = sshll.u32 %s3641_s12, 4  ;;  %s92_s1 = sshll.u32 %s3642_s14, 4  ;;  %s73_s13 = int_to_ptr.vmem [resolvable:$true] %s72_s13  ;;  %s93_s1 = int_to_ptr.vmem [resolvable:$true] %s92_s1 }
  0x49   :  { %s3545_s15 = scalar_lea.vmem %s73_s13, 64  ;;  %p3550_p3 = scmp.lt.s32.totalorder %s73_s13, %s73_s13 }
  0x4a   :  { %p3546_p2 = scmp.ne.s32.totalorder %s73_s13, %s3545_s15  ;;  %p3551_p4 = scmp.lt.s32.totalorder %s3545_s15, %s3545_s15 }
  0x4c   :  { %p3552_p5 = por %p3551_p4, %p3550_p3 }
  0x4e   :  { %p3553_p6 = pnand %p3552_p5, %p3546_p2 }
  0x50   :  { %3556 = shalt.err (!%p3553_p6)
}
  0x51   :  { %75 = dma.hbm_to_vmem [thread:$0]  %s4033_s4, 64, %s73_s13, [#allocation9]  }
  0x52   :  { %s3565_s17 = scalar_lea.vmem %s93_s1, 64  ;;  %p3570_p8 = scmp.lt.s32.totalorder %s93_s1, %s93_s1 }
  0x53   :  { %p3566_p7 = scmp.ne.s32.totalorder %s93_s1, %s3565_s17  ;;  %p3571_p9 = scmp.lt.s32.totalorder %s3565_s17, %s3565_s17 }
  0x55   :  { %p3572_p10 = por %p3571_p9, %p3570_p8 }
  0x57   :  { %p3573_p11 = pnand %p3572_p10, %p3566_p7 }
  0x59   :  { %3576 = shalt.err (!%p3573_p11)
}
  0x5a   :  { %95 = dma.hbm_to_vmem [thread:$0]  %s4035_s6, 64, %s93_s1, [#allocation12]  }
  0x5b   :  { %s3643_s3 = smov [#allocation16]  }
  0x5c   :  { %s118_s19 = sshll.u32 %s3643_s3, 4  ;;  %s119_s19 = int_to_ptr.vmem [resolvable:$true] %s118_s19 }
  0x5d   :  { %s3585_s20 = scalar_lea.vmem %s119_s19, 128  ;;  %p3590_p13 = scmp.lt.s32.totalorder %s119_s19, %s119_s19 }
  0x5e   :  { %p3586_p12 = scmp.ne.s32.totalorder %s119_s19, %s3585_s20  ;;  %p3591_p0 = scmp.lt.s32.totalorder %s3585_s20, %s3585_s20 }
  0x60   :  { %p3592_p1 = por %p3591_p0, %p3590_p13 }
  0x62   :  { %p3593_p2 = pnand %p3592_p1, %p3586_p12 }
  0x64   :  { %3596 = shalt.err (!%p3593_p2)
}
  0x65   :  { %121 = dma.hbm_to_vmem [thread:$0]  %s4039_s10, 128, %s119_s19, [#allocation15]  }
  0x66   :  { %3617 = dma.done.wait [#allocation3], 128  }
  0x67   :  { %3618 = vsyncadd [#allocation3], 4294967168 }
  0x68   :  { %3619 = dma.done.wait [#allocation6], 272  }
  0x69   :  { %3620 = vsyncadd [#allocation6], 4294967024 }
  0x6a   :  { %3621 = dma.done.wait [#allocation9], 4160  }
  0x6b   :  { %3622 = vsyncadd [#allocation9], 4294963136 }
  0x6c   :  { %3623 = dma.done.wait [#allocation12], 128  }
  0x6d   :  { %3624 = vsyncadd [#allocation12], 4294967168 }
  0x6e   :  { %3625 = dma.done.wait [#allocation15], 32896  }
  0x6f   :  { %3626 = vsyncadd [#allocation15], 4294934400  ;;  %v3644_v0 = vmov 0.0   ;;  %vm3645_vm0 = vmmov 0   ;;  %v3343_v1 = vld [vmem:[#allocation5 + $0x8] sm:$0xff]   ;;  %v3344_v2 = vld [vmem:[#allocation5] sm:$0xff]  }
  0x70   :  { %3315 = vmatprep.subr.bf16.mxu0 %v3644_v0  ;;  %3319 = vmatprep.mubr.msk.bf16.mxu0 %vm3645_vm0, %v3644_v0  ;;  %v150_v3 = vld [vmem:[#allocation2] sm:$0xff]  ;;  %v3350_v6 = vld [vmem:[#allocation8 + $0xe0] ss:$16 sps:$4 sm:$0xff]   ;;  %vm175_vm1 = vcmask 261120   ;;  %v3646_v37 = vmov 0  }
  0x71   :  { %3316 = vmatpush3.bf16.msra.mxu0 %v3343_v1  ;;  %v3345_v4 = vld [vmem:[#allocation8 + $0xe4] ss:$16 sps:$4 sm:$0xff]   ;;  %v3349_v5 = vld [vmem:[#allocation8 + $0xec] ss:$16 sps:$4 sm:$0xff]   ;;  %v151_v7 = vpack.c.bf16 %v150_v3, %v150_v3  ;;  %v3347_v9 = vld [vmem:[#allocation8 + $0xe8] ss:$16 sps:$4 sm:$0xff]   ;;  %468 = vmatprep.mubr.bf16.mxu1 %v3646_v37 }
  0x72   :  { %3317 = vmatprep.subr.bf16.mxu0 %v3644_v0  ;;  %436 = vmatprep.subr.bf16.mxu1 %v3345_v4  ;;  %v3351_v8 = vld [vmem:[#allocation8 + $0xc4] ss:$16 sps:$4 sm:$0xff]   ;;  %v3355_v10 = vld [vmem:[#allocation8 + $0xcc] ss:$16 sps:$4 sm:$0xff]   ;;  %v3356_v11 = vld [vmem:[#allocation8 + $0xc0] ss:$16 sps:$4 sm:$0xff]  }
  0x73   :  { %437 = vmatpush1.bf16.msra.mxu1 %v3350_v6  ;;  %v3357_v12 = vld [vmem:[#allocation8 + $0xa4] ss:$16 sps:$4 sm:$0xff]   ;;  %v3353_v13 = vld [vmem:[#allocation8 + $0xc8] ss:$16 sps:$4 sm:$0xff]   ;;  %v3361_v14 = vld [vmem:[#allocation8 + $0xac] ss:$16 sps:$4 sm:$0xff]  }
  0x74   :  { %438 = vmatprep.subr.bf16.mxu1 %v3351_v8  ;;  %v3362_v15 = vld [vmem:[#allocation8 + $0xa0] ss:$16 sps:$4 sm:$0xff]   ;;  %v3363_v16 = vld [vmem:[#allocation8 + $0x84] ss:$16 sps:$4 sm:$0xff]   ;;  %v3359_v17 = vld [vmem:[#allocation8 + $0xa8] ss:$16 sps:$4 sm:$0xff]  }
  0x75   :  { %3318 = vmatpush3.bf16.msra.mxu0 %v3344_v2  ;;  %v3368_v18 = vld [vmem:[#allocation8 + $0x80] ss:$16 sps:$4 sm:$0xff]   ;;  %v3367_v19 = vld [vmem:[#allocation8 + $0x8c] ss:$16 sps:$4 sm:$0xff]   ;;  %v3369_v20 = vld [vmem:[#allocation8 + $0x64] ss:$16 sps:$4 sm:$0xff]  }
  0x76   :  { %477 = vmatprep.subr.bf16.mxu0 %v3349_v5  ;;  %v3365_v21 = vld [vmem:[#allocation8 + $0x88] ss:$16 sps:$4 sm:$0xff]   ;;  %v3373_v22 = vld [vmem:[#allocation8 + $0x6c] ss:$16 sps:$4 sm:$0xff]   ;;  %v3374_v23 = vld [vmem:[#allocation8 + $0x60] ss:$16 sps:$4 sm:$0xff]  }
  0x77   :  { %439 = vmatpush1.bf16.msra.mxu1 %v3356_v11  ;;  %v3375_v24 = vld [vmem:[#allocation8 + $0x44] ss:$16 sps:$4 sm:$0xff]   ;;  %v3371_v25 = vld [vmem:[#allocation8 + $0x68] ss:$16 sps:$4 sm:$0xff]   ;;  %v3380_v26 = vld [vmem:[#allocation8 + $0x40] ss:$16 sps:$4 sm:$0xff]  }
  0x78   :  { %3320 = vmatmul.mubr.msk.bf16.vlgmr.msra.gmra.mxu0 %vm175_vm1, %v151_v7  ;;  %440 = vmatprep.subr.bf16.mxu1 %v3357_v12  ;;  %v3379_v27 = vld [vmem:[#allocation8 + $0x4c] ss:$16 sps:$4 sm:$0xff]   ;;  %v3377_v28 = vld [vmem:[#allocation8 + $0x48] ss:$16 sps:$4 sm:$0xff]   ;;  %v3381_v29 = vld [vmem:[#allocation8 + $0x24] ss:$16 sps:$4 sm:$0xff]  }
  0x79   :  { %478 = vmatpush1.bf16.msra.mxu0 %v3347_v9  ;;  %v3385_v30 = vld [vmem:[#allocation8 + $0x2c] ss:$16 sps:$4 sm:$0xff]   ;;  %v3383_v31 = vld [vmem:[#allocation8 + $0x28] ss:$16 sps:$4 sm:$0xff]   ;;  %v3386_v32 = vld [vmem:[#allocation8 + $0x20] ss:$16 sps:$4 sm:$0xff]   ;;  %509 = vmatprep.mubr.bf16.mxu0 %v3646_v37 }
  0x7a   :  { %479 = vmatprep.subr.bf16.mxu0 %v3355_v10  ;;  %v3387_v33 = vld [vmem:[#allocation8 + $0x4] ss:$16 sps:$4 sm:$0xff]   ;;  %v3391_v34 = vld [vmem:[#allocation8 + $0xc] ss:$16 sps:$4 sm:$0xff]   ;;  %v3389_v35 = vld [vmem:[#allocation8 + $0x8] ss:$16 sps:$4 sm:$0xff]  }
  0x7b   :  { %441 = vmatpush1.bf16.msra.mxu1 %v3362_v15  ;;  %v3392_v36 = vld [vmem:[#allocation8] ss:$16 sps:$4 sm:$0xff]   ;;  %v3020_v46 = vld [vmem:[#allocation7] ss:$0 sm:$0xff] }
  0x7c   :  { %442 = vmatprep.subr.bf16.mxu1 %v3363_v16  ;;  %v768_v38 = vld [vmem:[#allocation14 + $0x1c0] sm:$0xff] }
  0x7d   :  { %480 = vmatpush1.bf16.msra.mxu0 %v3353_v13  ;;  %v772_v39 = vld [vmem:[#allocation14 + $0x1e0] sm:$0xff] }
  0x7e   :  { %481 = vmatprep.subr.bf16.mxu0 %v3361_v14  ;;  %v896_v40 = vld [vmem:[#allocation14 + $0x5c0] sm:$0xff]  ;;  %v3112_v41 = vcombine.low %v768_v38, %v772_v39  ;;  %v3113_v42 = vcombine.high %v768_v38, %v772_v39 }
  0x7f   :  { %443 = vmatpush1.bf16.msra.mxu1 %v3368_v18  ;;  %v900_v43 = vld [vmem:[#allocation14 + $0x5e0] sm:$0xff] }
  0x80   :  { %444 = vmatprep.subr.bf16.mxu1 %v3369_v20  ;;  %v3240_v44 = vcombine.low %v896_v40, %v900_v43  ;;  %v3241_v45 = vcombine.high %v896_v40, %v900_v43  ;;  %v760_v55 = vld [vmem:[#allocation14 + $0x180] sm:$0xff] }
  0x81   :  { %482 = vmatpush1.bf16.msra.mxu0 %v3359_v17  ;;  %v764_v56 = vld [vmem:[#allocation14 + $0x1a0] sm:$0xff] }
  0x82   :  { %483 = vmatprep.subr.bf16.mxu0 %v3367_v19  ;;  %v888_v57 = vld [vmem:[#allocation14 + $0x580] sm:$0xff]  ;;  %v3105_v58 = vcombine.high %v760_v55, %v764_v56  ;;  %v3104_v60 = vcombine.low %v760_v55, %v764_v56 }
  0x83   :  { %445 = vmatpush1.bf16.msra.mxu1 %v3374_v23  ;;  %v892_v59 = vld [vmem:[#allocation14 + $0x5a0] sm:$0xff] }
  0x84   :  { %446 = vmatprep.subr.bf16.mxu1 %v3375_v24  ;;  %v3232_v61 = vcombine.low %v888_v57, %v892_v59  ;;  %v3233_v62 = vcombine.high %v888_v57, %v892_v59  ;;  %v752_v63 = vld [vmem:[#allocation14 + $0x140] sm:$0xff] }
  0x85   :  { %484 = vmatpush1.bf16.msra.mxu0 %v3365_v21  ;;  %v756_v0 = vld [vmem:[#allocation14 + $0x160] sm:$0xff] }
  0x86   :  { %485 = vmatprep.subr.bf16.mxu0 %v3373_v22  ;;  %v880_v1 = vld [vmem:[#allocation14 + $0x540] sm:$0xff]  ;;  %v3097_v2 = vcombine.high %v752_v63, %v756_v0  ;;  %v3096_v4 = vcombine.low %v752_v63, %v756_v0 }
  0x87   :  { %447 = vmatpush1.bf16.msra.mxu1 %v3380_v26  ;;  %v884_v3 = vld [vmem:[#allocation14 + $0x560] sm:$0xff] }
  0x88   :  { %448 = vmatprep.subr.bf16.mxu1 %v3381_v29  ;;  %v3224_v5 = vcombine.low %v880_v1, %v884_v3  ;;  %v3225_v6 = vcombine.high %v880_v1, %v884_v3  ;;  %v744_v7 = vld [vmem:[#allocation14 + $0x100] sm:$0xff] }
  0x89   :  { %486 = vmatpush1.bf16.msra.mxu0 %v3371_v25  ;;  %v748_v8 = vld [vmem:[#allocation14 + $0x120] sm:$0xff] }
  0x8a   :  { %487 = vmatprep.subr.bf16.mxu0 %v3379_v27  ;;  %v872_v9 = vld [vmem:[#allocation14 + $0x500] sm:$0xff]  ;;  %v3089_v10 = vcombine.high %v744_v7, %v748_v8  ;;  %v3088_v12 = vcombine.low %v744_v7, %v748_v8 }
  0x8b   :  { %449 = vmatpush1.bf16.msra.mxu1 %v3386_v32  ;;  %v876_v11 = vld [vmem:[#allocation14 + $0x520] sm:$0xff] }
  0x8c   :  { %450 = vmatprep.subr.bf16.mxu1 %v3387_v33  ;;  %v3216_v13 = vcombine.low %v872_v9, %v876_v11  ;;  %v3217_v14 = vcombine.high %v872_v9, %v876_v11  ;;  %v736_v15 = vld [vmem:[#allocation14 + $0xc0] sm:$0xff] }
  0x8d   :  { %488 = vmatpush1.bf16.msra.mxu0 %v3377_v28  ;;  %v740_v16 = vld [vmem:[#allocation14 + $0xe0] sm:$0xff] }
  0x8e   :  { %489 = vmatprep.subr.bf16.mxu0 %v3385_v30  ;;  %v864_v17 = vld [vmem:[#allocation14 + $0x4c0] sm:$0xff]  ;;  %v3081_v18 = vcombine.high %v736_v15, %v740_v16  ;;  %v3080_v20 = vcombine.low %v736_v15, %v740_v16 }
  0x8f   :  { %451 = vmatpush1.bf16.msra.mxu1 %v3392_v36  ;;  %v868_v19 = vld [vmem:[#allocation14 + $0x4e0] sm:$0xff] }
  0x90   :  { %2290 = vmatprep.subr.bf16.mxu1 %v3113_v42  ;;  %v3208_v21 = vcombine.low %v864_v17, %v868_v19  ;;  %v3209_v22 = vcombine.high %v864_v17, %v868_v19  ;;  %v728_v23 = vld [vmem:[#allocation14 + $0x80] sm:$0xff] }
  0x91   :  { %490 = vmatpush1.bf16.msra.mxu0 %v3383_v31  ;;  %v732_v24 = vld [vmem:[#allocation14 + $0xa0] sm:$0xff] }
  0x92   :  { %491 = vmatprep.subr.bf16.mxu0 %v3391_v34  ;;  %v856_v25 = vld [vmem:[#allocation14 + $0x480] sm:$0xff]  ;;  %v3073_v26 = vcombine.high %v728_v23, %v732_v24  ;;  %v3072_v28 = vcombine.low %v728_v23, %v732_v24 }
  0x93   :  { %v860_v27 = vld [vmem:[#allocation14 + $0x4a0] sm:$0xff] }
  0x94   :  { %v3200_v29 = vcombine.low %v856_v25, %v860_v27  ;;  %v3201_v30 = vcombine.high %v856_v25, %v860_v27  ;;  %v720_v31 = vld [vmem:[#allocation14 + $0x40] sm:$0xff] }
  0x95   :  { %492 = vmatpush1.bf16.msra.mxu0 %v3389_v35  ;;  %v724_v32 = vld [vmem:[#allocation14 + $0x60] sm:$0xff] }
  0x96   :  { %2331 = vmatprep.subr.bf16.mxu0 %v3241_v45  ;;  %v848_v33 = vld [vmem:[#allocation14 + $0x440] sm:$0xff]  ;;  %v3065_v34 = vcombine.high %v720_v31, %v724_v32  ;;  %v3064_v36 = vcombine.low %v720_v31, %v724_v32 }
  0x97   :  { %v852_v35 = vld [vmem:[#allocation14 + $0x460] sm:$0xff] }
  0x98   :  { %v3192_v37 = vcombine.low %v848_v33, %v852_v35  ;;  %v3193_v38 = vcombine.high %v848_v33, %v852_v35  ;;  %v712_v39 = vld [vmem:[#allocation14] sm:$0xff] }
  0x99   :  { %v716_v40 = vld [vmem:[#allocation14 + $0x20] sm:$0xff] }
  0x9a   :  { %v3057_v42 = vcombine.high %v712_v39, %v716_v40  ;;  %v844_v43 = vld [vmem:[#allocation14 + $0x420] sm:$0xff] }
  0x9b   :  { %v824_v55 = vld [vmem:[#allocation14 + $0x380] sm:$0xff] }
  0x9c   :  { %v828_v56 = vld [vmem:[#allocation14 + $0x3a0] sm:$0xff] }
  0x9d   :  { %v952_v57 = vld [vmem:[#allocation14 + $0x780] sm:$0xff] }
  0x9e   :  { %v956_v59 = vld [vmem:[#allocation14 + $0x7a0] sm:$0xff] }
  0x9f   :  { %v816_v63 = vld [vmem:[#allocation14 + $0x340] sm:$0xff] }
  0xa0   :  { %v820_v0 = vld [vmem:[#allocation14 + $0x360] sm:$0xff] }
  0xa1   :  { %v944_v1 = vld [vmem:[#allocation14 + $0x740] sm:$0xff] }
  0xa2   :  { %v948_v3 = vld [vmem:[#allocation14 + $0x760] sm:$0xff] }
  0xa3   :  { %v808_v7 = vld [vmem:[#allocation14 + $0x300] sm:$0xff] }
  0xa4   :  { %v812_v8 = vld [vmem:[#allocation14 + $0x320] sm:$0xff] }
  0xa5   :  { %v936_v9 = vld [vmem:[#allocation14 + $0x700] sm:$0xff] }
  0xa6   :  { %v940_v11 = vld [vmem:[#allocation14 + $0x720] sm:$0xff] }
  0xa7   :  { %v800_v15 = vld [vmem:[#allocation14 + $0x2c0] sm:$0xff] }
  0xa8   :  { %v804_v16 = vld [vmem:[#allocation14 + $0x2e0] sm:$0xff] }
  0xa9   :  { %v928_v17 = vld [vmem:[#allocation14 + $0x6c0] sm:$0xff] }
  0xaa   :  { %v932_v19 = vld [vmem:[#allocation14 + $0x6e0] sm:$0xff] }
  0xab   :  { %v792_v23 = vld [vmem:[#allocation14 + $0x280] sm:$0xff] }
  0xac   :  { %v796_v24 = vld [vmem:[#allocation14 + $0x2a0] sm:$0xff] }
  0xad   :  { %v920_v25 = vld [vmem:[#allocation14 + $0x680] sm:$0xff]  ;;  %v3137_v27 = vcombine.high %v792_v23, %v796_v24 }
  0xae   :  { %v916_v35 = vld [vmem:[#allocation14 + $0x660] sm:$0xff] }
 0x138   :  { %v213_v47 = vpop.f32.mrf.mxu0 }
 0x139   :  { %v214_v48 = vadd.f32 %v3020_v46, %v213_v47  ;;  %v832_v47 = vld [vmem:[#allocation14 + $0x3c0] sm:$0xff] }
 0x13a   :  { %v3321_v49 = vpop.f32.mrf.mxu0 }
 0x13b   :  { %v219_v50 = vmul.f32 0.01, %v214_v48  ;;  %v960_v49 = vld [vmem:[#allocation14 + $0x7c0] sm:$0xff] }
 0x13c   :  { %v216_v51 = vpop.f32.mrf.mxu0 }
 0x13d   :  { %v220_v52 = vmax.f32 %v214_v48, %v219_v50  ;;  %v836_v48 = vld [vmem:[#allocation14 + $0x3e0] sm:$0xff] }
 0x13e   :  { %v3322_v53 = vpop.f32.mrf.mxu0  ;;  %v3177_v50 = vcombine.high %v832_v47, %v836_v48  ;;  %v964_v51 = vld [vmem:[#allocation14 + $0x7e0] sm:$0xff] }
 0x13f   :  { %v221_v54 = vpack.c.bf16 %v220_v52, %v220_v52  ;;  %v3176_v52 = vcombine.low %v832_v47, %v836_v48  ;;  %v3304_v53 = vcombine.low %v960_v49, %v964_v51  ;;  %v3736_v47 = vld [vmem:[#allocation14 + $0x1c8] sm:$0xff] }
 0x140   :  { %v3738_v48 = vld [vmem:[#allocation14 + $0x1e8] sm:$0xff] }
 0x141   :  { %469 = vmatmul.mubr.bf16.vlgmr.msra.gmra.mxu1 %v221_v54  ;;  %510 = vmatmul.mubr.bf16.vlgmr.msra.gmra.mxu0 %v221_v54  ;;  %v3305_v54 = vcombine.high %v960_v49, %v964_v51  ;;  %v3740_v49 = vld [vmem:[#allocation14 + $0x5c8] sm:$0xff] }
 0x142   :  { %2291 = vmatpush1.bf16.msra.mxu1 %v3112_v41  ;;  %2332 = vmatpush1.bf16.msra.mxu0 %v3240_v44  ;;  %v840_v41 = vld [vmem:[#allocation14 + $0x400] sm:$0xff]  ;;  %v3056_v44 = vcombine.low %v712_v39, %v716_v40  ;;  %v3744_v51 = vld [vmem:[#allocation14 + $0x5e8] sm:$0xff] }
 0x143   :  { %2292 = vmatprep.subr.bf16.mxu1 %v3105_v58  ;;  %2333 = vmatprep.subr.bf16.mxu0 %v3233_v62  ;;  %v3184_v45 = vcombine.low %v840_v41, %v844_v43  ;;  %v3185_v46 = vcombine.high %v840_v41, %v844_v43  ;;  %v3169_v58 = vcombine.high %v824_v55, %v828_v56  ;;  %v904_v39 = vld [vmem:[#allocation14 + $0x600] sm:$0xff] }
 0x144   :  { %v3297_v62 = vcombine.high %v952_v57, %v956_v59  ;;  %v908_v40 = vld [vmem:[#allocation14 + $0x620] sm:$0xff] }
 0x146   :  { %2293 = vmatpush1.bf16.msra.mxu1 %v3104_v60  ;;  %2334 = vmatpush1.bf16.msra.mxu0 %v3232_v61  ;;  %v3168_v60 = vcombine.low %v824_v55, %v828_v56  ;;  %v3296_v61 = vcombine.low %v952_v57, %v956_v59  ;;  %v256_v55 = vlaneseq  ;;  %v254_v59 = vld [vmem:[#allocation10] sm:$0xf] }
 0x147   :  { %2294 = vmatprep.subr.bf16.mxu1 %v3097_v2  ;;  %2335 = vmatprep.subr.bf16.mxu0 %v3225_v6  ;;  %v3161_v2 = vcombine.high %v816_v63, %v820_v0  ;;  %v3289_v6 = vcombine.high %v944_v1, %v948_v3 }
 0x148   :  { %v3752_v56 = vshrl.u32 %v256_v55, 7 }
 0x14a   :  { %2295 = vmatpush1.bf16.msra.mxu1 %v3096_v4  ;;  %2336 = vmatpush1.bf16.msra.mxu0 %v3224_v5  ;;  %v3160_v4 = vcombine.low %v816_v63, %v820_v0  ;;  %v3288_v5 = vcombine.low %v944_v1, %v948_v3  ;;  %v3755_v57 = vsub.s32 0, %v3752_v56 }
 0x14b   :  { %2296 = vmatprep.subr.bf16.mxu1 %v3089_v10  ;;  %2337 = vmatprep.subr.bf16.mxu0 %v3217_v14  ;;  %v3153_v10 = vcombine.high %v808_v7, %v812_v8  ;;  %v3281_v14 = vcombine.high %v936_v9, %v940_v11 }
 0x14e   :  { %2297 = vmatpush1.bf16.msra.mxu1 %v3088_v12  ;;  %2338 = vmatpush1.bf16.msra.mxu0 %v3216_v13  ;;  %v3152_v12 = vcombine.low %v808_v7, %v812_v8  ;;  %v3280_v13 = vcombine.low %v936_v9, %v940_v11 }
 0x14f   :  { %2298 = vmatprep.subr.bf16.mxu1 %v3081_v18  ;;  %2339 = vmatprep.subr.bf16.mxu0 %v3209_v22  ;;  %v3145_v18 = vcombine.high %v800_v15, %v804_v16  ;;  %v3273_v22 = vcombine.high %v928_v17, %v932_v19 }
 0x152   :  { %2299 = vmatpush1.bf16.msra.mxu1 %v3080_v20  ;;  %2340 = vmatpush1.bf16.msra.mxu0 %v3208_v21  ;;  %v3144_v20 = vcombine.low %v800_v15, %v804_v16  ;;  %v3272_v21 = vcombine.low %v928_v17, %v932_v19 }
 0x153   :  { %2300 = vmatprep.subr.bf16.mxu1 %v3073_v26  ;;  %2341 = vmatprep.subr.bf16.mxu0 %v3201_v30  ;;  %v3136_v26 = vcombine.low %v792_v23, %v796_v24  ;;  %v788_v30 = vld [vmem:[#allocation14 + $0x260] sm:$0xff] }
 0x156   :  { %2301 = vmatpush1.bf16.msra.mxu1 %v3072_v28  ;;  %2342 = vmatpush1.bf16.msra.mxu0 %v3200_v29  ;;  %v924_v28 = vld [vmem:[#allocation14 + $0x6a0] sm:$0xff] }
 0x157   :  { %2302 = vmatprep.subr.bf16.mxu1 %v3065_v34  ;;  %2343 = vmatprep.subr.bf16.mxu0 %v3193_v38  ;;  %v784_v29 = vld [vmem:[#allocation14 + $0x240] sm:$0xff]  ;;  %v3264_v31 = vcombine.low %v920_v25, %v924_v28  ;;  %v3265_v32 = vcombine.high %v920_v25, %v924_v28 }
 0x158   :  { %v3129_v33 = vcombine.high %v784_v29, %v788_v30  ;;  %v912_v34 = vld [vmem:[#allocation14 + $0x640] sm:$0xff]  ;;  %v3128_v41 = vcombine.low %v784_v29, %v788_v30 }
 0x159   :  { %v780_v38 = vld [vmem:[#allocation14 + $0x220] sm:$0xff] }
 0x15a   :  { %2303 = vmatpush1.bf16.msra.mxu1 %v3064_v36  ;;  %2344 = vmatpush1.bf16.msra.mxu0 %v3192_v37  ;;  %v3257_v36 = vcombine.high %v912_v34, %v916_v35  ;;  %v776_v37 = vld [vmem:[#allocation14 + $0x200] sm:$0xff] }
 0x15b   :  { %2304 = vmatprep.subr.bf16.mxu1 %v3057_v42  ;;  %2345 = vmatprep.subr.bf16.mxu0 %v3185_v46  ;;  %v3256_v42 = vcombine.low %v912_v34, %v916_v35  ;;  %v3121_v43 = vcombine.high %v776_v37, %v780_v38  ;;  %v3248_v46 = vcombine.low %v904_v39, %v908_v40 }
 0x15e   :  { %2305 = vmatpush1.bf16.msra.mxu1 %v3056_v44  ;;  %2346 = vmatpush1.bf16.msra.mxu0 %v3184_v45  ;;  %v3249_v44 = vcombine.high %v904_v39, %v908_v40  ;;  %v3120_v45 = vcombine.low %v776_v37, %v780_v38 }
 0x15f   :  { %2306 = vmatprep.subr.bf16.mxu1 %v3177_v50  ;;  %2347 = vmatprep.subr.bf16.mxu0 %v3305_v54  ;;  %v3115_v50 = vcombine.high %v3736_v47, %v3738_v48  ;;  %v3243_v54 = vcombine.high %v3740_v49, %v3744_v51 }
 0x162   :  { %2307 = vmatpush2.bf16.msra.mxu1 %v3176_v52  ;;  %2348 = vmatpush2.bf16.msra.mxu0 %v3304_v53  ;;  %v3114_v52 = vcombine.low %v3736_v47, %v3738_v48  ;;  %v3242_v53 = vcombine.low %v3740_v49, %v3744_v51 }
 0x163   :  { %2308 = vmatprep.subr.bf16.mxu1 %v3169_v58  ;;  %2349 = vmatprep.subr.bf16.mxu0 %v3297_v62  ;;  %v3758_v58 = vsub.s32 2, %v3752_v56  ;;  %v259_v62 = vrot.slane %v254_v59, %v3755_v57 }
 0x165   :  { %v267_v63 = vrot.slane %v254_v59, %v3758_v58 }
 0x166   :  { %2309 = vmatpush2.bf16.msra.mxu1 %v3168_v60  ;;  %2350 = vmatpush2.bf16.msra.mxu0 %v3296_v61  ;;  %v3761_v60 = vsub.s32 1, %v3752_v56  ;;  %v3764_v61 = vsub.s32 3, %v3752_v56 }
 0x167   :  { %2310 = vmatprep.subr.bf16.mxu1 %v3161_v2  ;;  %2351 = vmatprep.subr.bf16.mxu0 %v3289_v6 }
 0x168   :  { %v263_v2 = vrot.slane %v254_v59, %v3761_v60  ;;  %v271_v3 = vrot.slane %v254_v59, %v3764_v61 }
 0x16a   :  { %2311 = vmatpush2.bf16.msra.mxu1 %v3160_v4  ;;  %2352 = vmatpush2.bf16.msra.mxu0 %v3288_v5 }
 0x16b   :  { %2312 = vmatprep.subr.bf16.mxu1 %v3153_v10  ;;  %2353 = vmatprep.subr.bf16.mxu0 %v3281_v14 }
 0x16e   :  { %2313 = vmatpush2.bf16.msra.mxu1 %v3152_v12  ;;  %2354 = vmatpush2.bf16.msra.mxu0 %v3280_v13 }
 0x16f   :  { %2314 = vmatprep.subr.bf16.mxu1 %v3145_v18  ;;  %2355 = vmatprep.subr.bf16.mxu0 %v3273_v22 }
 0x172   :  { %2315 = vmatpush2.bf16.msra.mxu1 %v3144_v20  ;;  %2356 = vmatpush2.bf16.msra.mxu0 %v3272_v21 }
 0x173   :  { %2316 = vmatprep.subr.bf16.mxu1 %v3137_v27  ;;  %2357 = vmatprep.subr.bf16.mxu0 %v3265_v32 }
 0x176   :  { %2317 = vmatpush2.bf16.msra.mxu1 %v3136_v26  ;;  %2358 = vmatpush2.bf16.msra.mxu0 %v3264_v31 }
 0x177   :  { %2318 = vmatprep.subr.bf16.mxu1 %v3129_v33  ;;  %2359 = vmatprep.subr.bf16.mxu0 %v3257_v36 }
 0x17a   :  { %2319 = vmatpush2.bf16.msra.mxu1 %v3128_v41  ;;  %2360 = vmatpush2.bf16.msra.mxu0 %v3256_v42 }
 0x17b   :  { %2320 = vmatprep.subr.bf16.mxu1 %v3121_v43  ;;  %2361 = vmatprep.subr.bf16.mxu0 %v3249_v44 }
 0x17e   :  { %2321 = vmatpush2.bf16.msra.mxu1 %v3120_v45  ;;  %2362 = vmatpush2.bf16.msra.mxu0 %v3248_v46 }
 0x17f   :  { %2372 = vmatprep.subr.bf16.mxu1 %v3115_v50  ;;  %2413 = vmatprep.subr.bf16.mxu0 %v3243_v54 }
 0x201   :  { %v470_v0 = vpop.f32.mrf.mxu1  ;;  %v511_v1 = vpop.f32.mrf.mxu0 }
 0x202   :  { %v3770_v4 = vadd.f32 %v470_v0, %v259_v62  ;;  %v3772_v5 = vadd.f32 %v511_v1, %v267_v63 }
 0x203   :  { %v472_v6 = vpop.f32.mrf.mxu1  ;;  %v513_v7 = vpop.f32.mrf.mxu0 }
 0x204   :  { %v518_v8 = vrot.slane %v3770_v4, 4  ;;  %v546_v9 = vmul.f32 %v3770_v4, %v3770_v4  ;;  %v530_v10 = vrot.slane %v3772_v5, 4  ;;  %v548_v11 = vmul.f32 %v3772_v5, %v3772_v5 }
 0x205   :  { %v3780_v12 = vadd.f32 %v472_v6, %v263_v2  ;;  %v3782_v13 = vadd.f32 %v513_v7, %v271_v3  ;;  %v474_v14 = vpop.f32.mrf.mxu1  ;;  %v515_v15 = vpop.f32.mrf.mxu0 }
 0x206   :  { %v519_v16 = vadd.f32 %v518_v8, %v3770_v4  ;;  %v550_v17 = vrot.slane %v546_v9, 4  ;;  %v531_v18 = vadd.f32 %v530_v10, %v3772_v5  ;;  %v562_v19 = vrot.slane %v548_v11, 4 }
 0x207   :  { %v524_v20 = vrot.slane %v3780_v12, 4  ;;  %v547_v21 = vmul.f32 %v3780_v12, %v3780_v12  ;;  %v536_v22 = vrot.slane %v3782_v13, 4  ;;  %v549_v23 = vmul.f32 %v3782_v13, %v3782_v13  ;;  %v475_v24 = vpop.f32.mrf.mxu1  ;;  %v516_v25 = vpop.f32.mrf.mxu0 }
 0x208   :  { %v520_v26 = vrot.slane %v519_v16, 2  ;;  %v551_v27 = vadd.f32 %v550_v17, %v546_v9  ;;  %v532_v28 = vrot.slane %v531_v18, 2  ;;  %v563_v29 = vadd.f32 %v562_v19, %v548_v11 }
 0x209   :  { %v525_v30 = vadd.f32 %v524_v20, %v3780_v12  ;;  %v556_v31 = vrot.slane %v547_v21, 4  ;;  %v537_v32 = vadd.f32 %v536_v22, %v3782_v13  ;;  %v568_v33 = vrot.slane %v549_v23, 4 }
 0x20a   :  { %v521_v34 = vadd.f32 %v520_v26, %v519_v16  ;;  %v552_v35 = vrot.slane %v551_v27, 2  ;;  %v533_v36 = vadd.f32 %v532_v28, %v531_v18  ;;  %v564_v37 = vrot.slane %v563_v29, 2 }
 0x20b   :  { %v526_v38 = vrot.slane %v525_v30, 2  ;;  %v557_v39 = vadd.f32 %v556_v31, %v547_v21  ;;  %v538_v40 = vrot.slane %v537_v32, 2  ;;  %v569_v41 = vadd.f32 %v568_v33, %v549_v23 }
 0x20c   :  { %v522_v42 = vrot.slane %v521_v34, 1  ;;  %v553_v43 = vadd.f32 %v552_v35, %v551_v27  ;;  %v534_v44 = vrot.slane %v533_v36, 1  ;;  %v565_v45 = vadd.f32 %v564_v37, %v563_v29  ;;  %v594_v37 = vld [vmem:[#allocation11] sm:$0xf] }
 0x20d   :  { %v527_v46 = vadd.f32 %v526_v38, %v525_v30  ;;  %v558_v50 = vrot.slane %v557_v39, 2  ;;  %v539_v54 = vadd.f32 %v538_v40, %v537_v32  ;;  %v570_v55 = vrot.slane %v569_v41, 2 }
 0x20e   :  { %v523_v59 = vadd.f32 %v522_v42, %v521_v34  ;;  %v554_v62 = vrot.slane %v553_v43, 1  ;;  %v535_v63 = vadd.f32 %v534_v44, %v533_v36  ;;  %v566_v0 = vrot.slane %v565_v45, 1 }
 0x20f   :  { %v528_v1 = vrot.slane %v527_v46, 1  ;;  %v559_v2 = vadd.f32 %v558_v50, %v557_v39  ;;  %v540_v3 = vrot.slane %v539_v54, 1  ;;  %v571_v6 = vadd.f32 %v570_v55, %v569_v41 }
 0x210   :  { %v542_v7 = vmul.f32 0.125, %v523_v59  ;;  %v555_v8 = vadd.f32 %v554_v62, %v553_v43  ;;  %v544_v9 = vmul.f32 0.125, %v535_v63  ;;  %v567_v10 = vadd.f32 %v566_v0, %v565_v45 }
 0x211   :  { %v529_v11 = vadd.f32 %v528_v1, %v527_v46  ;;  %v560_v14 = vrot.slane %v559_v2, 1  ;;  %v541_v15 = vadd.f32 %v540_v3, %v539_v54  ;;  %v572_v16 = vrot.slane %v571_v6, 1 }
 0x212   :  { %v574_v17 = vmul.f32 0.125, %v555_v8  ;;  %v578_v18 = vmul.f32 %v542_v7, %v542_v7  ;;  %v576_v19 = vmul.f32 0.125, %v567_v10  ;;  %v580_v20 = vmul.f32 %v544_v9, %v544_v9 }
 0x213   :  { %v543_v21 = vmul.f32 0.125, %v529_v11  ;;  %v561_v22 = vadd.f32 %v560_v14, %v559_v2  ;;  %v545_v23 = vmul.f32 0.125, %v541_v15  ;;  %v573_v24 = vadd.f32 %v572_v16, %v571_v6 }
 0x214   :  { %v582_v25 = vsub.f32 %v574_v17, %v578_v18  ;;  %v584_v26 = vsub.f32 %v576_v19, %v580_v20  ;;  %v599_v38 = vrot.slane %v594_v37, %v3755_v57  ;;  %v3647_v39 = vmov 1966171168   ;;  %v620_v19 = vld [vmem:[#allocation13] sm:$0xf] }
 0x215   :  { %v575_v27 = vmul.f32 0.125, %v561_v22  ;;  %v579_v28 = vmul.f32 %v543_v21, %v543_v21  ;;  %v577_v29 = vmul.f32 0.125, %v573_v24  ;;  %v581_v30 = vmul.f32 %v545_v23, %v545_v23 }
 0x216   :  { %v586_v31 = vadd.f32 1e-05, %v582_v25  ;;  %v588_v32 = vadd.f32 1e-05, %v584_v26  ;;  %v632_v40 = vunpack.c.l.s4 %v3647_v39  ;;  %v607_v41 = vrot.slane %v594_v37, %v3758_v58  ;;  %v889_v39 = vld [vmem:[#allocation14 + $0x588] sm:$0xff] }
 0x217   :  { %v583_v33 = vsub.f32 %v575_v27, %v579_v28  ;;  %v585_v34 = vsub.f32 %v577_v29, %v581_v30  ;;  %v603_v43 = vrot.slane %v594_v37, %v3761_v60  ;;  %v611_v45 = vrot.slane %v594_v37, %v3764_v61 }
 0x218   :  { %3393 = vrsqrt.f32 %v586_v31  ;;  %v633_v50 = vunpack.c.0.s8 %v632_v40  ;;  %v893_v40 = vld [vmem:[#allocation14 + $0x5a8] sm:$0xff] }
 0x219   :  { %3395 = vrsqrt.f32 %v588_v32  ;;  %v587_v35 = vadd.f32 1e-05, %v583_v33  ;;  %v589_v36 = vadd.f32 1e-05, %v585_v34 }
 0x21a   :  { %v3799_v2 = vsub.s32 %v633_v50, %v3752_v56  ;;  %v3235_v50 = vcombine.high %v889_v39, %v893_v40 }
 0x21b   :  { %3397 = vrsqrt.f32 %v587_v35 }
 0x21c   :  { %3399 = vrsqrt.f32 %v589_v36 }
 0x225   :  { %v3394_v42 = vpop.eup %3393 }
 0x226   :  { %v3396_v44 = vpop.eup %3395  ;;  %v616_v46 = vmul.f32 %v3394_v42, %v599_v38  ;;  %v765_v38 = vld [vmem:[#allocation14 + $0x1a8] sm:$0xff] }
 0x227   :  { %v618_v55 = vmul.f32 %v3396_v44, %v607_v41 }
 0x228   :  { %v3398_v54 = vpop.eup %3397  ;;  %v621_v0 = vmul.f32 %v616_v46, %v542_v7  ;;  %v658_v16 = vrot.slane %v616_v46, %v3755_v57 }
 0x229   :  { %v3400_v59 = vpop.eup %3399  ;;  %v617_v62 = vmul.f32 %v3398_v54, %v603_v43  ;;  %v623_v3 = vmul.f32 %v618_v55, %v544_v9  ;;  %v666_v17 = vrot.slane %v618_v55, %v3755_v57  ;;  %v757_v54 = vld [vmem:[#allocation14 + $0x168] sm:$0xff] }
 0x22a   :  { %v619_v63 = vmul.f32 %v3400_v59, %v611_v45  ;;  %v753_v45 = vld [vmem:[#allocation14 + $0x148] sm:$0xff] }
 0x22b   :  { %v622_v1 = vmul.f32 %v617_v62, %v543_v21  ;;  %v662_v18 = vrot.slane %v617_v62, %v3755_v57  ;;  %v671_v21 = vmul.f32 %v658_v16, %v3770_v4  ;;  %v673_v22 = vmul.f32 %v666_v17, %v3772_v5  ;;  %v881_v55 = vld [vmem:[#allocation14 + $0x548] sm:$0xff] }
 0x22c   :  { %v624_v6 = vmul.f32 %v619_v63, %v545_v23  ;;  %v670_v7 = vrot.slane %v619_v63, %v3755_v57  ;;  %v885_v59 = vld [vmem:[#allocation14 + $0x568] sm:$0xff]  ;;  %v3234_v63 = vcombine.low %v889_v39, %v893_v40  ;;  %v3098_v47 = vcombine.low %v753_v45, %v757_v54 }
 0x22d   :  { %v629_v8 = vcombine.low %v621_v0, %v622_v1  ;;  %v672_v23 = vmul.f32 %v662_v18, %v3780_v12  ;;  %v3099_v0 = vcombine.high %v753_v45, %v757_v54  ;;  %v3227_v1 = vcombine.high %v881_v55, %v885_v59  ;;  %v961_v39 = vld [vmem:[#allocation14 + $0x7c8] sm:$0xff] }
 0x22e   :  { %v630_v10 = vcombine.low %v623_v3, %v624_v6  ;;  %v674_v24 = vmul.f32 %v670_v7, %v3782_v13  ;;  %v761_v13 = vld [vmem:[#allocation14 + $0x188] sm:$0xff]  ;;  %v3226_v48 = vcombine.low %v881_v55, %v885_v59 }
 0x22f   :  { %v637_v11 = vrot.slane %v629_v8, %v3799_v2  ;;  %v3107_v46 = vcombine.high %v761_v13, %v765_v38  ;;  %v3106_v62 = vcombine.low %v761_v13, %v765_v38  ;;  %v745_v3 = vld [vmem:[#allocation14 + $0x108] sm:$0xff] }
 0x230   :  { %v644_v14 = vrot.slane %v630_v10, %v3799_v2  ;;  %v749_v6 = vld [vmem:[#allocation14 + $0x128] sm:$0xff] }
 0x231   :  { %v873_v8 = vld [vmem:[#allocation14 + $0x508] sm:$0xff]  ;;  %v3091_v49 = vcombine.high %v745_v3, %v749_v6 }
 0x232   :  { %v645_v15 = vcombine.low %v637_v11, %v644_v14  ;;  %v877_v10 = vld [vmem:[#allocation14 + $0x528] sm:$0xff] }
 0x233   :  { %v3219_v51 = vcombine.high %v873_v8, %v877_v10  ;;  %v865_v11 = vld [vmem:[#allocation14 + $0x4c8] sm:$0xff]  ;;  %v3218_v16 = vcombine.low %v873_v8, %v877_v10 }
 0x234   :  { %v652_v20 = vrot.slane %v645_v15, %v3799_v2  ;;  %v869_v14 = vld [vmem:[#allocation14 + $0x4e8] sm:$0xff]  ;;  %v3090_v15 = vcombine.low %v745_v3, %v749_v6 }
 0x235   :  { %v3211_v18 = vcombine.high %v865_v11, %v869_v14  ;;  %v729_v7 = vld [vmem:[#allocation14 + $0x88] sm:$0xff] }
 0x236   :  { %v654_v9 = vsub.f32 %v620_v19, %v652_v20  ;;  %v733_v19 = vld [vmem:[#allocation14 + $0xa8] sm:$0xff] }
 0x237   :  { %v857_v20 = vld [vmem:[#allocation14 + $0x488] sm:$0xff] }
 0x238   :  { %v683_v25 = vrot.slane %v654_v9, %v3761_v60  ;;  %v691_v26 = vrot.slane %v654_v9, %v3764_v61  ;;  %v679_v27 = vrot.slane %v654_v9, %v3755_v57  ;;  %v687_v28 = vrot.slane %v654_v9, %v3758_v58  ;;  %v861_v9 = vld [vmem:[#allocation14 + $0x4a8] sm:$0xff] }
 0x239   :  { %v837_v38 = vld [vmem:[#allocation14 + $0x3e8] sm:$0xff] }
 0x23a   :  { %v697_v29 = vadd.f32 %v683_v25, %v672_v23  ;;  %v699_v30 = vadd.f32 %v691_v26, %v674_v24  ;;  %v696_v31 = vadd.f32 %v679_v27, %v671_v21  ;;  %v698_v32 = vadd.f32 %v687_v28, %v673_v22  ;;  %v721_v25 = vld [vmem:[#allocation14 + $0x48] sm:$0xff] }
 0x23b   :  { %v3210_v22 = vcombine.low %v865_v11, %v869_v14  ;;  %v3075_v23 = vcombine.high %v729_v7, %v733_v19  ;;  %v3203_v24 = vcombine.high %v857_v20, %v861_v9  ;;  %v725_v26 = vld [vmem:[#allocation14 + $0x68] sm:$0xff] }
 0x23c   :  { %v701_v33 = vmul.f32 0.01, %v697_v29  ;;  %v703_v4 = vmul.f32 0.01, %v699_v30  ;;  %v700_v34 = vmul.f32 0.01, %v696_v31 }
 0x23d   :  { %v702_v5 = vmul.f32 0.01, %v698_v32  ;;  %v849_v27 = vld [vmem:[#allocation14 + $0x448] sm:$0xff] }
 0x23e   :  { %v705_v35 = vmax.f32 %v697_v29, %v701_v33  ;;  %v707_v12 = vmax.f32 %v699_v30, %v703_v4  ;;  %v704_v36 = vmax.f32 %v696_v31, %v700_v34  ;;  %v853_v28 = vld [vmem:[#allocation14 + $0x468] sm:$0xff]  ;;  %v3074_v29 = vcombine.low %v729_v7, %v733_v19 }
 0x23f   :  { %v706_v37 = vmax.f32 %v698_v32, %v702_v5  ;;  %v3202_v30 = vcombine.low %v857_v20, %v861_v9  ;;  %v3067_v31 = vcombine.high %v721_v25, %v725_v26  ;;  %v3195_v32 = vcombine.high %v849_v27, %v853_v28  ;;  %v713_v33 = vld [vmem:[#allocation14 + $0x8] sm:$0xff] }
 0x240   :  { %v3816_v41 = vpack.c.bf16 %v705_v35, %v705_v35  ;;  %v3818_v42 = vpack.c.bf16 %v707_v12, %v707_v12  ;;  %v3820_v43 = vpack.c.bf16 %v704_v36, %v704_v36  ;;  %v717_v4 = vld [vmem:[#allocation14 + $0x28] sm:$0xff]  ;;  %v3066_v35 = vcombine.low %v721_v25, %v725_v26 }
 0x241   :  { %v3822_v44 = vpack.c.bf16 %v706_v37, %v706_v37  ;;  %v841_v34 = vld [vmem:[#allocation14 + $0x408] sm:$0xff]  ;;  %v3194_v12 = vcombine.low %v849_v27, %v853_v28  ;;  %v3059_v36 = vcombine.high %v713_v33, %v717_v4  ;;  %v3058_v45 = vcombine.low %v713_v33, %v717_v4 }
 0x242   :  { %2322 = vmatprep.mubr.bf16.mxu1 %v3816_v41  ;;  %2363 = vmatprep.mubr.bf16.mxu0 %v3818_v42  ;;  %v845_v5 = vld [vmem:[#allocation14 + $0x428] sm:$0xff] }
 0x243   :  { %2323 = vmatmul.mubr.bf16.vlgmr.msra.gmra.mxu1 %v3820_v43  ;;  %2364 = vmatmul.mubr.bf16.vlgmr.msra.gmra.mxu0 %v3822_v44  ;;  %v3187_v13 = vcombine.high %v841_v34, %v845_v5  ;;  %v833_v37 = vld [vmem:[#allocation14 + $0x3c8] sm:$0xff] }
 0x244   :  { %2373 = vmatpush1.bf16.msra.mxu1 %v3114_v52  ;;  %2414 = vmatpush1.bf16.msra.mxu0 %v3242_v53  ;;  %v737_v52 = vld [vmem:[#allocation14 + $0xc8] sm:$0xff] }
 0x245   :  { %2404 = vmatprep.mubr.bf16.mxu1 %v3816_v41  ;;  %2445 = vmatprep.mubr.bf16.mxu0 %v3818_v42  ;;  %v741_v53 = vld [vmem:[#allocation14 + $0xe8] sm:$0xff] }
 0x246   :  { %2374 = vmatprep.subr.bf16.mxu1 %v3107_v46  ;;  %2415 = vmatprep.subr.bf16.mxu0 %v3235_v50  ;;  %v3083_v17 = vcombine.high %v737_v52, %v741_v53  ;;  %v3082_v21 = vcombine.low %v737_v52, %v741_v53  ;;  %v965_v40 = vld [vmem:[#allocation14 + $0x7e8] sm:$0xff]  ;;  %v3186_v46 = vcombine.low %v841_v34, %v845_v5 }
 0x247   :  { %v3179_v50 = vcombine.high %v833_v37, %v837_v38  ;;  %v3307_v54 = vcombine.high %v961_v39, %v965_v40  ;;  %v825_v55 = vld [vmem:[#allocation14 + $0x388] sm:$0xff] }
 0x248   :  { %2375 = vmatpush1.bf16.msra.mxu1 %v3106_v62  ;;  %2416 = vmatpush1.bf16.msra.mxu0 %v3234_v63  ;;  %v829_v59 = vld [vmem:[#allocation14 + $0x3a8] sm:$0xff] }
 0x249   :  { %2376 = vmatprep.subr.bf16.mxu1 %v3099_v0  ;;  %2417 = vmatprep.subr.bf16.mxu0 %v3227_v1  ;;  %v953_v62 = vld [vmem:[#allocation14 + $0x788] sm:$0xff]  ;;  %v3178_v0 = vcombine.low %v833_v37, %v837_v38  ;;  %v3306_v1 = vcombine.low %v961_v39, %v965_v40  ;;  %v3171_v3 = vcombine.high %v825_v55, %v829_v59 }
 0x24a   :  { %v957_v63 = vld [vmem:[#allocation14 + $0x7a8] sm:$0xff] }
 0x24b   :  { %v3299_v6 = vcombine.high %v953_v62, %v957_v63  ;;  %v817_v8 = vld [vmem:[#allocation14 + $0x348] sm:$0xff] }
 0x24c   :  { %2377 = vmatpush1.bf16.msra.mxu1 %v3098_v47  ;;  %2418 = vmatpush1.bf16.msra.mxu0 %v3226_v48  ;;  %v821_v10 = vld [vmem:[#allocation14 + $0x368] sm:$0xff] }
 0x24d   :  { %2378 = vmatprep.subr.bf16.mxu1 %v3091_v49  ;;  %2419 = vmatprep.subr.bf16.mxu0 %v3219_v51  ;;  %v945_v47 = vld [vmem:[#allocation14 + $0x748] sm:$0xff]  ;;  %v3170_v49 = vcombine.low %v825_v55, %v829_v59  ;;  %v3298_v51 = vcombine.low %v953_v62, %v957_v63  ;;  %v3163_v52 = vcombine.high %v817_v8, %v821_v10  ;;  %v770_v62 = vld [vmem:[#allocation14 + $0x1d0] sm:$0xff] }
 0x24e   :  { %v949_v48 = vld [vmem:[#allocation14 + $0x768] sm:$0xff]  ;;  %v774_v63 = vld [vmem:[#allocation14 + $0x1f0] sm:$0xff] }
 0x24f   :  { %v3291_v53 = vcombine.high %v945_v47, %v949_v48  ;;  %v809_v11 = vld [vmem:[#allocation14 + $0x308] sm:$0xff] }
 0x250   :  { %2379 = vmatpush1.bf16.msra.mxu1 %v3090_v15  ;;  %2420 = vmatpush1.bf16.msra.mxu0 %v3218_v16  ;;  %v813_v14 = vld [vmem:[#allocation14 + $0x328] sm:$0xff] }
 0x251   :  { %2380 = vmatprep.subr.bf16.mxu1 %v3083_v17  ;;  %2421 = vmatprep.subr.bf16.mxu0 %v3211_v18  ;;  %v937_v15 = vld [vmem:[#allocation14 + $0x708] sm:$0xff]  ;;  %v3162_v17 = vcombine.low %v817_v8, %v821_v10  ;;  %v3290_v18 = vcombine.low %v945_v47, %v949_v48  ;;  %v3155_v7 = vcombine.high %v809_v11, %v813_v14  ;;  %v762_v47 = vld [vmem:[#allocation14 + $0x190] sm:$0xff] }
 0x252   :  { %v941_v16 = vld [vmem:[#allocation14 + $0x728] sm:$0xff]  ;;  %v3117_v8 = vcombine.high %v770_v62, %v774_v63  ;;  %v766_v48 = vld [vmem:[#allocation14 + $0x1b0] sm:$0xff] }
 0x253   :  { %v3283_v19 = vcombine.high %v937_v15, %v941_v16  ;;  %v801_v20 = vld [vmem:[#allocation14 + $0x2c8] sm:$0xff] }
 0x254   :  { %2381 = vmatpush1.bf16.msra.mxu1 %v3082_v21  ;;  %2422 = vmatpush1.bf16.msra.mxu0 %v3210_v22  ;;  %v805_v9 = vld [vmem:[#allocation14 + $0x2e8] sm:$0xff] }
 0x255   :  { %2382 = vmatprep.subr.bf16.mxu1 %v3075_v23  ;;  %2423 = vmatprep.subr.bf16.mxu0 %v3203_v24  ;;  %v929_v21 = vld [vmem:[#allocation14 + $0x6c8] sm:$0xff]  ;;  %v3154_v23 = vcombine.low %v809_v11, %v813_v14  ;;  %v3282_v24 = vcombine.low %v937_v15, %v941_v16  ;;  %v3147_v25 = vcombine.high %v801_v20, %v805_v9  ;;  %v754_v15 = vld [vmem:[#allocation14 + $0x150] sm:$0xff] }
 0x256   :  { %v933_v22 = vld [vmem:[#allocation14 + $0x6e8] sm:$0xff]  ;;  %v3109_v11 = vcombine.high %v762_v47, %v766_v48  ;;  %v758_v16 = vld [vmem:[#allocation14 + $0x170] sm:$0xff] }
 0x257   :  { %v3275_v26 = vcombine.high %v929_v21, %v933_v22  ;;  %v793_v27 = vld [vmem:[#allocation14 + $0x288] sm:$0xff] }
 0x258   :  { %2383 = vmatpush1.bf16.msra.mxu1 %v3074_v29  ;;  %2424 = vmatpush1.bf16.msra.mxu0 %v3202_v30  ;;  %v797_v28 = vld [vmem:[#allocation14 + $0x2a8] sm:$0xff] }
 0x259   :  { %2384 = vmatprep.subr.bf16.mxu1 %v3067_v31  ;;  %2425 = vmatprep.subr.bf16.mxu0 %v3195_v32  ;;  %v921_v29 = vld [vmem:[#allocation14 + $0x688] sm:$0xff]  ;;  %v3146_v31 = vcombine.low %v801_v20, %v805_v9  ;;  %v3274_v32 = vcombine.low %v929_v21, %v933_v22  ;;  %v3139_v33 = vcombine.high %v793_v27, %v797_v28  ;;  %v746_v21 = vld [vmem:[#allocation14 + $0x110] sm:$0xff] }
 0x25a   :  { %v925_v30 = vld [vmem:[#allocation14 + $0x6a8] sm:$0xff]  ;;  %v3101_v20 = vcombine.high %v754_v15, %v758_v16  ;;  %v750_v22 = vld [vmem:[#allocation14 + $0x130] sm:$0xff] }
 0x25b   :  { %v3267_v4 = vcombine.high %v921_v29, %v925_v30  ;;  %v785_v34 = vld [vmem:[#allocation14 + $0x248] sm:$0xff] }
 0x25c   :  { %2385 = vmatpush1.bf16.msra.mxu1 %v3066_v35  ;;  %2426 = vmatpush1.bf16.msra.mxu0 %v3194_v12  ;;  %v789_v5 = vld [vmem:[#allocation14 + $0x268] sm:$0xff] }
 0x25d   :  { %2386 = vmatprep.subr.bf16.mxu1 %v3059_v36  ;;  %2427 = vmatprep.subr.bf16.mxu0 %v3187_v13  ;;  %v913_v35 = vld [vmem:[#allocation14 + $0x648] sm:$0xff]  ;;  %v3138_v36 = vcombine.low %v793_v27, %v797_v28  ;;  %v3266_v13 = vcombine.low %v921_v29, %v925_v30  ;;  %v3131_v37 = vcombine.high %v785_v34, %v789_v5  ;;  %v738_v29 = vld [vmem:[#allocation14 + $0xd0] sm:$0xff] }
 0x25e   :  { %v917_v12 = vld [vmem:[#allocation14 + $0x668] sm:$0xff]  ;;  %v3093_v27 = vcombine.high %v746_v21, %v750_v22  ;;  %v742_v30 = vld [vmem:[#allocation14 + $0xf0] sm:$0xff] }
 0x25f   :  { %v3259_v38 = vcombine.high %v913_v35, %v917_v12  ;;  %v777_v39 = vld [vmem:[#allocation14 + $0x208] sm:$0xff] }
 0x260   :  { %2387 = vmatpush1.bf16.msra.mxu1 %v3058_v45  ;;  %2428 = vmatpush1.bf16.msra.mxu0 %v3186_v46  ;;  %v781_v40 = vld [vmem:[#allocation14 + $0x228] sm:$0xff] }
 0x261   :  { %2388 = vmatprep.subr.bf16.mxu1 %v3179_v50  ;;  %2429 = vmatprep.subr.bf16.mxu0 %v3307_v54  ;;  %v905_v45 = vld [vmem:[#allocation14 + $0x608] sm:$0xff]  ;;  %v3130_v50 = vcombine.low %v785_v34, %v789_v5  ;;  %v3258_v54 = vcombine.low %v913_v35, %v917_v12  ;;  %v3123_v55 = vcombine.high %v777_v39, %v781_v40  ;;  %v730_v35 = vld [vmem:[#allocation14 + $0x90] sm:$0xff] }
 0x262   :  { %v909_v46 = vld [vmem:[#allocation14 + $0x628] sm:$0xff]  ;;  %v3085_v34 = vcombine.high %v738_v29, %v742_v30  ;;  %v734_v12 = vld [vmem:[#allocation14 + $0xb0] sm:$0xff] }
 0x263   :  { %v3251_v59 = vcombine.high %v905_v45, %v909_v46 }
 0x264   :  { %2389 = vmatpush2.bf16.msra.mxu1 %v3178_v0  ;;  %2430 = vmatpush2.bf16.msra.mxu0 %v3306_v1  ;;  %v898_v0 = vld [vmem:[#allocation14 + $0x5d0] sm:$0xff] }
 0x265   :  { %2390 = vmatprep.subr.bf16.mxu1 %v3171_v3  ;;  %2431 = vmatprep.subr.bf16.mxu0 %v3299_v6  ;;  %v902_v1 = vld [vmem:[#allocation14 + $0x5f0] sm:$0xff]  ;;  %v3122_v3 = vcombine.low %v777_v39, %v781_v40  ;;  %v3250_v6 = vcombine.low %v905_v45, %v909_v46  ;;  %v3077_v39 = vcombine.high %v730_v35, %v734_v12 }
 0x266   :  { %v3245_v10 = vcombine.high %v898_v0, %v902_v1  ;;  %v722_v45 = vld [vmem:[#allocation14 + $0x50] sm:$0xff] }
 0x267   :  { %v726_v46 = vld [vmem:[#allocation14 + $0x70] sm:$0xff] }
 0x268   :  { %2391 = vmatpush2.bf16.msra.mxu1 %v3170_v49  ;;  %2432 = vmatpush2.bf16.msra.mxu0 %v3298_v51  ;;  %v890_v49 = vld [vmem:[#allocation14 + $0x590] sm:$0xff] }
 0x269   :  { %2392 = vmatprep.subr.bf16.mxu1 %v3163_v52  ;;  %2433 = vmatprep.subr.bf16.mxu0 %v3291_v53  ;;  %v894_v51 = vld [vmem:[#allocation14 + $0x5b0] sm:$0xff]  ;;  %v3116_v52 = vcombine.low %v770_v62, %v774_v63  ;;  %v3244_v53 = vcombine.low %v898_v0, %v902_v1  ;;  %v3069_v62 = vcombine.high %v722_v45, %v726_v46 }
 0x26a   :  { %v3237_v14 = vcombine.high %v890_v49, %v894_v51  ;;  %v714_v0 = vld [vmem:[#allocation14 + $0x10] sm:$0xff] }
 0x26b   :  { %v718_v1 = vld [vmem:[#allocation14 + $0x30] sm:$0xff] }
 0x26c   :  { %2393 = vmatpush2.bf16.msra.mxu1 %v3162_v17  ;;  %2434 = vmatpush2.bf16.msra.mxu0 %v3290_v18  ;;  %v882_v17 = vld [vmem:[#allocation14 + $0x550] sm:$0xff] }
 0x26d   :  { %2394 = vmatprep.subr.bf16.mxu1 %v3155_v7  ;;  %2435 = vmatprep.subr.bf16.mxu0 %v3283_v19  ;;  %v886_v18 = vld [vmem:[#allocation14 + $0x570] sm:$0xff]  ;;  %v3108_v7 = vcombine.low %v762_v47, %v766_v48  ;;  %v3236_v19 = vcombine.low %v890_v49, %v894_v51  ;;  %v3061_v47 = vcombine.high %v714_v0, %v718_v1 }
 0x26e   :  { %v3229_v9 = vcombine.high %v882_v17, %v886_v18  ;;  %v834_v49 = vld [vmem:[#allocation14 + $0x3d0] sm:$0xff] }
 0x26f   :  { %v838_v51 = vld [vmem:[#allocation14 + $0x3f0] sm:$0xff] }
 0x270   :  { %2395 = vmatpush2.bf16.msra.mxu1 %v3154_v23  ;;  %2436 = vmatpush2.bf16.msra.mxu0 %v3282_v24  ;;  %v874_v23 = vld [vmem:[#allocation14 + $0x510] sm:$0xff] }
 0x271   :  { %2396 = vmatprep.subr.bf16.mxu1 %v3147_v25  ;;  %2437 = vmatprep.subr.bf16.mxu0 %v3275_v26  ;;  %v878_v24 = vld [vmem:[#allocation14 + $0x530] sm:$0xff]  ;;  %v3100_v25 = vcombine.low %v754_v15, %v758_v16  ;;  %v3228_v26 = vcombine.low %v882_v17, %v886_v18  ;;  %v3181_v15 = vcombine.high %v834_v49, %v838_v51 }
 0x272   :  { %v3221_v28 = vcombine.high %v874_v23, %v878_v24  ;;  %v826_v17 = vld [vmem:[#allocation14 + $0x390] sm:$0xff] }
 0x273   :  { %v830_v18 = vld [vmem:[#allocation14 + $0x3b0] sm:$0xff] }
 0x274   :  { %2397 = vmatpush2.bf16.msra.mxu1 %v3146_v31  ;;  %2438 = vmatpush2.bf16.msra.mxu0 %v3274_v32  ;;  %v866_v31 = vld [vmem:[#allocation14 + $0x4d0] sm:$0xff] }
 0x275   :  { %2398 = vmatprep.subr.bf16.mxu1 %v3139_v33  ;;  %2439 = vmatprep.subr.bf16.mxu0 %v3267_v4  ;;  %v870_v32 = vld [vmem:[#allocation14 + $0x4f0] sm:$0xff]  ;;  %v3092_v33 = vcombine.low %v746_v21, %v750_v22  ;;  %v3220_v4 = vcombine.low %v874_v23, %v878_v24  ;;  %v3173_v21 = vcombine.high %v826_v17, %v830_v18 }
 0x276   :  { %v3213_v5 = vcombine.high %v866_v31, %v870_v32  ;;  %v818_v23 = vld [vmem:[#allocation14 + $0x350] sm:$0xff] }
 0x277   :  { %v822_v24 = vld [vmem:[#allocation14 + $0x370] sm:$0xff] }
 0x278   :  { %2399 = vmatpush2.bf16.msra.mxu1 %v3138_v36  ;;  %2440 = vmatpush2.bf16.msra.mxu0 %v3266_v13  ;;  %v858_v36 = vld [vmem:[#allocation14 + $0x490] sm:$0xff] }
 0x279   :  { %2400 = vmatprep.subr.bf16.mxu1 %v3131_v37  ;;  %2441 = vmatprep.subr.bf16.mxu0 %v3259_v38  ;;  %v862_v13 = vld [vmem:[#allocation14 + $0x4b0] sm:$0xff]  ;;  %v3084_v37 = vcombine.low %v738_v29, %v742_v30  ;;  %v3212_v38 = vcombine.low %v866_v31, %v870_v32  ;;  %v3165_v29 = vcombine.high %v818_v23, %v822_v24 }
 0x27a   :  { %v3205_v40 = vcombine.high %v858_v36, %v862_v13  ;;  %v810_v31 = vld [vmem:[#allocation14 + $0x310] sm:$0xff] }
 0x27b   :  { %v814_v32 = vld [vmem:[#allocation14 + $0x330] sm:$0xff] }
 0x27c   :  { %2401 = vmatpush2.bf16.msra.mxu1 %v3130_v50  ;;  %2442 = vmatpush2.bf16.msra.mxu0 %v3258_v54  ;;  %v850_v50 = vld [vmem:[#allocation14 + $0x450] sm:$0xff] }
 0x27d   :  { %2402 = vmatprep.subr.bf16.mxu1 %v3123_v55  ;;  %2443 = vmatprep.subr.bf16.mxu0 %v3251_v59  ;;  %v854_v54 = vld [vmem:[#allocation14 + $0x470] sm:$0xff]  ;;  %v3076_v55 = vcombine.low %v730_v35, %v734_v12  ;;  %v3204_v59 = vcombine.low %v858_v36, %v862_v13  ;;  %v3157_v35 = vcombine.high %v810_v31, %v814_v32 }
 0x27e   :  { %v3197_v63 = vcombine.high %v850_v50, %v854_v54  ;;  %v802_v36 = vld [vmem:[#allocation14 + $0x2d0] sm:$0xff] }
 0x27f   :  { %v806_v13 = vld [vmem:[#allocation14 + $0x2f0] sm:$0xff] }
 0x280   :  { %2403 = vmatpush2.bf16.msra.mxu1 %v3122_v3  ;;  %2444 = vmatpush2.bf16.msra.mxu0 %v3250_v6  ;;  %v842_v3 = vld [vmem:[#allocation14 + $0x410] sm:$0xff] }
 0x281   :  { %2454 = vmatprep.subr.bf16.mxu1 %v3117_v8  ;;  %2495 = vmatprep.subr.bf16.mxu0 %v3245_v10  ;;  %v846_v6 = vld [vmem:[#allocation14 + $0x430] sm:$0xff]  ;;  %v3068_v8 = vcombine.low %v722_v45, %v726_v46  ;;  %v3196_v10 = vcombine.low %v850_v50, %v854_v54  ;;  %v3149_v45 = vcombine.high %v802_v36, %v806_v13 }
 0x282   :  { %v3189_v48 = vcombine.high %v842_v3, %v846_v6  ;;  %v794_v50 = vld [vmem:[#allocation14 + $0x290] sm:$0xff] }
 0x283   :  { %2405 = vmatmul.mubr.bf16.vlgmr.msra.gmra.mxu1 %v3820_v43  ;;  %2446 = vmatmul.mubr.bf16.vlgmr.msra.gmra.mxu0 %v3822_v44  ;;  %v798_v54 = vld [vmem:[#allocation14 + $0x2b0] sm:$0xff] }
 0x284   :  { %2455 = vmatpush1.bf16.msra.mxu1 %v3116_v52  ;;  %2486 = vmatprep.mubr.bf16.mxu1 %v3816_v41  ;;  %v962_v52 = vld [vmem:[#allocation14 + $0x7d0] sm:$0xff] }
 0x285   :  { %2496 = vmatpush1.bf16.msra.mxu0 %v3244_v53  ;;  %2527 = vmatprep.mubr.bf16.mxu0 %v3818_v42  ;;  %v966_v53 = vld [vmem:[#allocation14 + $0x7f0] sm:$0xff] }
 0x286   :  { %2456 = vmatprep.subr.bf16.mxu1 %v3109_v11  ;;  %2497 = vmatprep.subr.bf16.mxu0 %v3237_v14  ;;  %v3060_v11 = vcombine.low %v714_v0, %v718_v1  ;;  %v3188_v14 = vcombine.low %v842_v3, %v846_v6  ;;  %v3309_v16 = vcombine.high %v962_v52, %v966_v53  ;;  %v786_v3 = vld [vmem:[#allocation14 + $0x250] sm:$0xff] }
 0x287   :  { %v3141_v0 = vcombine.high %v794_v50, %v798_v54  ;;  %v790_v6 = vld [vmem:[#allocation14 + $0x270] sm:$0xff] }
 0x288   :  { %2457 = vmatpush1.bf16.msra.mxu1 %v3108_v7  ;;  %v954_v7 = vld [vmem:[#allocation14 + $0x790] sm:$0xff] }
 0x289   :  { %2498 = vmatpush1.bf16.msra.mxu0 %v3236_v19  ;;  %2458 = vmatprep.subr.bf16.mxu1 %v3101_v20  ;;  %v958_v19 = vld [vmem:[#allocation14 + $0x7b0] sm:$0xff]  ;;  %v3180_v20 = vcombine.low %v834_v49, %v838_v51  ;;  %v3133_v49 = vcombine.high %v786_v3, %v790_v6 }
 0x28a   :  { %2499 = vmatprep.subr.bf16.mxu0 %v3229_v9  ;;  %v3308_v9 = vcombine.low %v962_v52, %v966_v53  ;;  %v3301_v22 = vcombine.high %v954_v7, %v958_v19  ;;  %v778_v52 = vld [vmem:[#allocation14 + $0x210] sm:$0xff] }
 0x28b   :  { %v782_v53 = vld [vmem:[#allocation14 + $0x230] sm:$0xff] }
 0x28c   :  { %2459 = vmatpush1.bf16.msra.mxu1 %v3100_v25  ;;  %v946_v25 = vld [vmem:[#allocation14 + $0x750] sm:$0xff] }
 0x28d   :  { %2500 = vmatpush1.bf16.msra.mxu0 %v3228_v26  ;;  %2460 = vmatprep.subr.bf16.mxu1 %v3093_v27  ;;  %v950_v26 = vld [vmem:[#allocation14 + $0x770] sm:$0xff]  ;;  %v3172_v27 = vcombine.low %v826_v17, %v830_v18  ;;  %v3125_v17 = vcombine.high %v778_v52, %v782_v53 }
 0x28e   :  { %2501 = vmatprep.subr.bf16.mxu0 %v3221_v28  ;;  %v3300_v28 = vcombine.low %v954_v7, %v958_v19  ;;  %v3293_v30 = vcombine.high %v946_v25, %v950_v26  ;;  %v771_v7 = vld [vmem:[#allocation14 + $0x1d8] sm:$0xff] }
 0x28f   :  { %v775_v19 = vld [vmem:[#allocation14 + $0x1f8] sm:$0xff] }
 0x290   :  { %2461 = vmatpush1.bf16.msra.mxu1 %v3092_v33  ;;  %v938_v33 = vld [vmem:[#allocation14 + $0x710] sm:$0xff] }
 0x291   :  { %2502 = vmatpush1.bf16.msra.mxu0 %v3220_v4  ;;  %2462 = vmatprep.subr.bf16.mxu1 %v3085_v34  ;;  %v942_v4 = vld [vmem:[#allocation14 + $0x730] sm:$0xff]  ;;  %v3164_v34 = vcombine.low %v818_v23, %v822_v24  ;;  %v3119_v23 = vcombine.high %v771_v7, %v775_v19 }
 0x292   :  { %2503 = vmatprep.subr.bf16.mxu0 %v3213_v5  ;;  %v3292_v5 = vcombine.low %v946_v25, %v950_v26  ;;  %v3285_v12 = vcombine.high %v938_v33, %v942_v4  ;;  %v763_v25 = vld [vmem:[#allocation14 + $0x198] sm:$0xff] }
 0x293   :  { %v767_v26 = vld [vmem:[#allocation14 + $0x1b8] sm:$0xff] }
 0x294   :  { %2463 = vmatpush1.bf16.msra.mxu1 %v3084_v37  ;;  %v930_v37 = vld [vmem:[#allocation14 + $0x6d0] sm:$0xff] }
 0x295   :  { %2504 = vmatpush1.bf16.msra.mxu0 %v3212_v38  ;;  %2464 = vmatprep.subr.bf16.mxu1 %v3077_v39  ;;  %v934_v38 = vld [vmem:[#allocation14 + $0x6f0] sm:$0xff]  ;;  %v3156_v39 = vcombine.low %v810_v31, %v814_v32  ;;  %v3111_v31 = vcombine.high %v763_v25, %v767_v26  ;;  %v755_v32 = vld [vmem:[#allocation14 + $0x158] sm:$0xff] }
 0x296   :  { %2505 = vmatprep.subr.bf16.mxu0 %v3205_v40  ;;  %v3284_v40 = vcombine.low %v938_v33, %v942_v4  ;;  %v3277_v46 = vcombine.high %v930_v37, %v934_v38  ;;  %v759_v33 = vld [vmem:[#allocation14 + $0x178] sm:$0xff] }
 0x298   :  { %2465 = vmatpush1.bf16.msra.mxu1 %v3076_v55  ;;  %v922_v55 = vld [vmem:[#allocation14 + $0x690] sm:$0xff] }
 0x299   :  { %2506 = vmatpush1.bf16.msra.mxu0 %v3204_v59  ;;  %2466 = vmatprep.subr.bf16.mxu1 %v3069_v62  ;;  %v926_v59 = vld [vmem:[#allocation14 + $0x6b0] sm:$0xff]  ;;  %v3148_v62 = vcombine.low %v802_v36, %v806_v13  ;;  %v3103_v36 = vcombine.high %v755_v32, %v759_v33 }
 0x29a   :  { %2507 = vmatprep.subr.bf16.mxu0 %v3197_v63  ;;  %v3276_v63 = vcombine.low %v930_v37, %v934_v38  ;;  %v3269_v1 = vcombine.high %v922_v55, %v926_v59  ;;  %v747_v37 = vld [vmem:[#allocation14 + $0x118] sm:$0xff] }
 0x29b   :  { %v751_v38 = vld [vmem:[#allocation14 + $0x138] sm:$0xff] }
 0x29c   :  { %2467 = vmatpush1.bf16.msra.mxu1 %v3068_v8  ;;  %v914_v8 = vld [vmem:[#allocation14 + $0x650] sm:$0xff] }
 0x29d   :  { %2508 = vmatpush1.bf16.msra.mxu0 %v3196_v10  ;;  %2468 = vmatprep.subr.bf16.mxu1 %v3061_v47  ;;  %v918_v10 = vld [vmem:[#allocation14 + $0x670] sm:$0xff]  ;;  %v3140_v47 = vcombine.low %v794_v50, %v798_v54  ;;  %v3095_v50 = vcombine.high %v747_v37, %v751_v38  ;;  %v739_v54 = vld [vmem:[#allocation14 + $0xd8] sm:$0xff] }
 0x29e   :  { %2509 = vmatprep.subr.bf16.mxu0 %v3189_v48  ;;  %v3268_v48 = vcombine.low %v922_v55, %v926_v59  ;;  %v3261_v51 = vcombine.high %v914_v8, %v918_v10  ;;  %v743_v55 = vld [vmem:[#allocation14 + $0xf8] sm:$0xff] }
 0x29f   :  { %v867_v59 = vld [vmem:[#allocation14 + $0x4d8] sm:$0xff] }
 0x2a0   :  { %2469 = vmatpush1.bf16.msra.mxu1 %v3060_v11  ;;  %v906_v11 = vld [vmem:[#allocation14 + $0x610] sm:$0xff] }
 0x2a1   :  { %2510 = vmatpush1.bf16.msra.mxu0 %v3188_v14  ;;  %2470 = vmatprep.subr.bf16.mxu1 %v3181_v15  ;;  %v910_v14 = vld [vmem:[#allocation14 + $0x630] sm:$0xff]  ;;  %v3132_v15 = vcombine.low %v786_v3, %v790_v6  ;;  %v731_v3 = vld [vmem:[#allocation14 + $0x98] sm:$0xff] }
 0x2a2   :  { %2511 = vmatprep.subr.bf16.mxu0 %v3309_v16  ;;  %v3260_v16 = vcombine.low %v914_v8, %v918_v10  ;;  %v3253_v18 = vcombine.high %v906_v11, %v910_v14  ;;  %v735_v6 = vld [vmem:[#allocation14 + $0xb8] sm:$0xff] }
 0x2a3   :  { %v859_v8 = vld [vmem:[#allocation14 + $0x498] sm:$0xff] }
 0x2a4   :  { %2471 = vmatpush2.bf16.msra.mxu1 %v3180_v20  ;;  %v899_v20 = vld [vmem:[#allocation14 + $0x5d8] sm:$0xff] }
 0x2a5   :  { %2512 = vmatpush2.bf16.msra.mxu0 %v3308_v9  ;;  %2472 = vmatprep.subr.bf16.mxu1 %v3173_v21  ;;  %v903_v9 = vld [vmem:[#allocation14 + $0x5f8] sm:$0xff]  ;;  %v3124_v21 = vcombine.low %v778_v52, %v782_v53 }
 0x2a6   :  { %2513 = vmatprep.subr.bf16.mxu0 %v3301_v22  ;;  %v3252_v22 = vcombine.low %v906_v11, %v910_v14  ;;  %v3247_v24 = vcombine.high %v899_v20, %v903_v9  ;;  %v863_v10 = vld [vmem:[#allocation14 + $0x4b8] sm:$0xff] }
 0x2a7   :  { %v723_v52 = vld [vmem:[#allocation14 + $0x58] sm:$0xff] }
 0x2a8   :  { %2473 = vmatpush2.bf16.msra.mxu1 %v3172_v27  ;;  %v3118_v27 = vcombine.low %v771_v7, %v775_v19  ;;  %v727_v53 = vld [vmem:[#allocation14 + $0x78] sm:$0xff] }
 0x2a9   :  { %2514 = vmatpush2.bf16.msra.mxu0 %v3300_v28  ;;  %2474 = vmatprep.subr.bf16.mxu1 %v3165_v29  ;;  %v891_v28 = vld [vmem:[#allocation14 + $0x598] sm:$0xff] }
 0x2aa   :  { %2515 = vmatprep.subr.bf16.mxu0 %v3293_v30  ;;  %v895_v29 = vld [vmem:[#allocation14 + $0x5b8] sm:$0xff]  ;;  %v3246_v30 = vcombine.low %v899_v20, %v903_v9 }
 0x2ab   :  { %v3239_v4 = vcombine.high %v891_v28, %v895_v29  ;;  %v851_v11 = vld [vmem:[#allocation14 + $0x458] sm:$0xff] }
 0x2ac   :  { %2475 = vmatpush2.bf16.msra.mxu1 %v3164_v34  ;;  %v883_v34 = vld [vmem:[#allocation14 + $0x558] sm:$0xff] }
 0x2ad   :  { %2516 = vmatpush2.bf16.msra.mxu0 %v3292_v5  ;;  %2476 = vmatprep.subr.bf16.mxu1 %v3157_v35  ;;  %v887_v5 = vld [vmem:[#allocation14 + $0x578] sm:$0xff]  ;;  %v3110_v35 = vcombine.low %v763_v25, %v767_v26 }
 0x2ae   :  { %2517 = vmatprep.subr.bf16.mxu0 %v3285_v12  ;;  %v3238_v12 = vcombine.low %v891_v28, %v895_v29  ;;  %v3231_v13 = vcombine.high %v883_v34, %v887_v5  ;;  %v855_v14 = vld [vmem:[#allocation14 + $0x478] sm:$0xff] }
 0x2af   :  { %v715_v7 = vld [vmem:[#allocation14 + $0x18] sm:$0xff] }
 0x2b0   :  { %2477 = vmatpush2.bf16.msra.mxu1 %v3156_v39  ;;  %v875_v39 = vld [vmem:[#allocation14 + $0x518] sm:$0xff] }
 0x2b1   :  { %2518 = vmatpush2.bf16.msra.mxu0 %v3284_v40  ;;  %2478 = vmatprep.subr.bf16.mxu1 %v3149_v45  ;;  %v879_v40 = vld [vmem:[#allocation14 + $0x538] sm:$0xff]  ;;  %v3102_v45 = vcombine.low %v755_v32, %v759_v33 }
 0x2b2   :  { %2519 = vmatprep.subr.bf16.mxu0 %v3277_v46  ;;  %v3230_v46 = vcombine.low %v883_v34, %v887_v5  ;;  %v719_v19 = vld [vmem:[#allocation14 + $0x38] sm:$0xff] }
 0x2b3   :  { %v843_v20 = vld [vmem:[#allocation14 + $0x418] sm:$0xff]  ;;  %v3062_v29 = vcombine.low %v715_v7, %v719_v19 }
 0x2b4   :  { %2479 = vmatpush2.bf16.msra.mxu1 %v3148_v62  ;;  %v871_v62 = vld [vmem:[#allocation14 + $0x4f8] sm:$0xff] }
 0x2b5   :  { %2520 = vmatpush2.bf16.msra.mxu0 %v3276_v63  ;;  %2480 = vmatprep.subr.bf16.mxu1 %v3141_v0  ;;  %v3222_v63 = vcombine.low %v875_v39, %v879_v40  ;;  %v3087_v0 = vcombine.high %v739_v54, %v743_v55  ;;  %v847_v9 = vld [vmem:[#allocation14 + $0x438] sm:$0xff] }
 0x2b6   :  { %2521 = vmatprep.subr.bf16.mxu0 %v3269_v1  ;;  %v3215_v1 = vcombine.high %v867_v59, %v871_v62  ;;  %v835_v25 = vld [vmem:[#allocation14 + $0x3d8] sm:$0xff] }
 0x2b7   :  { %v839_v26 = vld [vmem:[#allocation14 + $0x3f8] sm:$0xff] }
 0x2b8   :  { %2481 = vmatpush2.bf16.msra.mxu1 %v3140_v47  ;;  %v3086_v47 = vcombine.low %v739_v54, %v743_v55  ;;  %v967_v28 = vld [vmem:[#allocation14 + $0x7f8] sm:$0xff] }
 0x2b9   :  { %2522 = vmatpush2.bf16.msra.mxu0 %v3268_v48  ;;  %2482 = vmatprep.subr.bf16.mxu1 %v3133_v49  ;;  %v3214_v48 = vcombine.low %v867_v59, %v871_v62  ;;  %v3079_v49 = vcombine.high %v731_v3, %v735_v6  ;;  %v827_v33 = vld [vmem:[#allocation14 + $0x398] sm:$0xff] }
 0x2ba   :  { %2523 = vmatprep.subr.bf16.mxu0 %v3261_v51  ;;  %v3207_v51 = vcombine.high %v859_v8, %v863_v10  ;;  %v955_v34 = vld [vmem:[#allocation14 + $0x798] sm:$0xff] }
 0x2bb   :  { %v959_v5 = vld [vmem:[#allocation14 + $0x7b8] sm:$0xff] }
 0x2bc   :  { %2483 = vmatpush2.bf16.msra.mxu1 %v3132_v15  ;;  %v3078_v15 = vcombine.low %v731_v3, %v735_v6  ;;  %v811_v54 = vld [vmem:[#allocation14 + $0x318] sm:$0xff] }
 0x2bd   :  { %2524 = vmatpush2.bf16.msra.mxu0 %v3260_v16  ;;  %2484 = vmatprep.subr.bf16.mxu1 %v3125_v17  ;;  %v3206_v16 = vcombine.low %v859_v8, %v863_v10  ;;  %v3071_v17 = vcombine.high %v723_v52, %v727_v53  ;;  %v815_v55 = vld [vmem:[#allocation14 + $0x338] sm:$0xff] }
 0x2be   :  { %2525 = vmatprep.subr.bf16.mxu0 %v3253_v18  ;;  %v3199_v18 = vcombine.high %v851_v11, %v855_v14  ;;  %v939_v59 = vld [vmem:[#allocation14 + $0x718] sm:$0xff] }
 0x2bf   :  { %v943_v62 = vld [vmem:[#allocation14 + $0x738] sm:$0xff] }
 0x2c0   :  { %2485 = vmatpush2.bf16.msra.mxu1 %v3124_v21  ;;  %v3070_v21 = vcombine.low %v723_v52, %v727_v53  ;;  %v803_v3 = vld [vmem:[#allocation14 + $0x2d8] sm:$0xff] }
 0x2c1   :  { %2526 = vmatpush2.bf16.msra.mxu0 %v3252_v22  ;;  %2536 = vmatprep.subr.bf16.mxu1 %v3119_v23  ;;  %v3198_v22 = vcombine.low %v851_v11, %v855_v14  ;;  %v3063_v23 = vcombine.high %v715_v7, %v719_v19  ;;  %v807_v6 = vld [vmem:[#allocation14 + $0x2f8] sm:$0xff] }
 0x2c2   :  { %2577 = vmatprep.subr.bf16.mxu0 %v3247_v24  ;;  %v3191_v24 = vcombine.high %v843_v20, %v847_v9  ;;  %v931_v8 = vld [vmem:[#allocation14 + $0x6d8] sm:$0xff] }
 0x2c3   :  { %2487 = vmatmul.mubr.bf16.vlgmr.msra.gmra.mxu1 %v3820_v43  ;;  %v935_v10 = vld [vmem:[#allocation14 + $0x6f8] sm:$0xff] }
 0x2c4   :  { %2528 = vmatmul.mubr.bf16.vlgmr.msra.gmra.mxu0 %v3822_v44  ;;  %2537 = vmatpush1.bf16.msra.mxu1 %v3118_v27  ;;  %v963_v27 = vld [vmem:[#allocation14 + $0x7d8] sm:$0xff] }
 0x2c5   :  { %2568 = vmatprep.mubr.bf16.mxu1 %v3816_v41  ;;  %2578 = vmatpush1.bf16.msra.mxu0 %v3246_v30  ;;  %v3223_v41 = vcombine.high %v875_v39, %v879_v40  ;;  %v3190_v30 = vcombine.low %v843_v20, %v847_v9  ;;  %v3311_v32 = vcombine.high %v963_v27, %v967_v28  ;;  %v947_v39 = vld [vmem:[#allocation14 + $0x758] sm:$0xff] }
 0x2c6   :  { %2609 = vmatprep.mubr.bf16.mxu0 %v3818_v42  ;;  %2538 = vmatprep.subr.bf16.mxu1 %v3111_v31  ;;  %v3094_v42 = vcombine.low %v747_v37, %v751_v38  ;;  %v3183_v31 = vcombine.high %v835_v25, %v839_v26  ;;  %v819_v37 = vld [vmem:[#allocation14 + $0x358] sm:$0xff] }
 0x2c7   :  { %2579 = vmatprep.subr.bf16.mxu0 %v3239_v4  ;;  %v831_v4 = vld [vmem:[#allocation14 + $0x3b8] sm:$0xff] }
 0x2c8   :  { %2539 = vmatpush1.bf16.msra.mxu1 %v3110_v35  ;;  %v3182_v35 = vcombine.low %v835_v25, %v839_v26  ;;  %v823_v38 = vld [vmem:[#allocation14 + $0x378] sm:$0xff] }
 0x2c9   :  { %2580 = vmatpush1.bf16.msra.mxu0 %v3238_v12  ;;  %2540 = vmatprep.subr.bf16.mxu1 %v3103_v36  ;;  %v3310_v12 = vcombine.low %v963_v27, %v967_v28  ;;  %v3175_v36 = vcombine.high %v827_v33, %v831_v4  ;;  %v951_v40 = vld [vmem:[#allocation14 + $0x778] sm:$0xff] }
 0x2ca   :  { %2581 = vmatprep.subr.bf16.mxu0 %v3231_v13  ;;  %v3303_v13 = vcombine.high %v955_v34, %v959_v5  ;;  %v795_v52 = vld [vmem:[#allocation14 + $0x298] sm:$0xff] }
 0x2cb   :  { %v799_v53 = vld [vmem:[#allocation14 + $0x2b8] sm:$0xff] }
 0x2cc   :  { %2541 = vmatpush1.bf16.msra.mxu1 %v3102_v45  ;;  %v3174_v45 = vcombine.low %v827_v33, %v831_v4  ;;  %v923_v11 = vld [vmem:[#allocation14 + $0x698] sm:$0xff] }
 0x2cd   :  { %2582 = vmatpush1.bf16.msra.mxu0 %v3230_v46  ;;  %2542 = vmatprep.subr.bf16.mxu1 %v3095_v50  ;;  %v3302_v46 = vcombine.low %v955_v34, %v959_v5  ;;  %v3167_v50 = vcombine.high %v819_v37, %v823_v38  ;;  %v927_v14 = vld [vmem:[#allocation14 + $0x6b8] sm:$0xff] }
 0x2ce   :  { %2583 = vmatprep.subr.bf16.mxu0 %v3223_v41  ;;  %v3295_v41 = vcombine.high %v947_v39, %v951_v40  ;;  %v787_v7 = vld [vmem:[#allocation14 + $0x258] sm:$0xff] }
 0x2cf   :  { %v791_v19 = vld [vmem:[#allocation14 + $0x278] sm:$0xff] }
 0x2d0   :  { %2543 = vmatpush1.bf16.msra.mxu1 %v3094_v42  ;;  %v3166_v42 = vcombine.low %v819_v37, %v823_v38  ;;  %v915_v20 = vld [vmem:[#allocation14 + $0x658] sm:$0xff] }
 0x2d1   :  { %2584 = vmatpush1.bf16.msra.mxu0 %v3222_v63  ;;  %2544 = vmatprep.subr.bf16.mxu1 %v3087_v0  ;;  %v3294_v63 = vcombine.low %v947_v39, %v951_v40  ;;  %v3159_v0 = vcombine.high %v811_v54, %v815_v55  ;;  %v919_v9 = vld [vmem:[#allocation14 + $0x678] sm:$0xff] }
 0x2d2   :  { %2585 = vmatprep.subr.bf16.mxu0 %v3215_v1  ;;  %v3287_v1 = vcombine.high %v939_v59, %v943_v62  ;;  %v779_v25 = vld [vmem:[#allocation14 + $0x218] sm:$0xff] }
 0x2d3   :  { %v783_v26 = vld [vmem:[#allocation14 + $0x238] sm:$0xff] }
 0x2d4   :  { %2545 = vmatpush1.bf16.msra.mxu1 %v3086_v47  ;;  %v3158_v47 = vcombine.low %v811_v54, %v815_v55  ;;  %v907_v27 = vld [vmem:[#allocation14 + $0x618] sm:$0xff]  ;;  %v3126_v33 = vcombine.low %v779_v25, %v783_v26 }
 0x2d5   :  { %2586 = vmatpush1.bf16.msra.mxu0 %v3214_v48  ;;  %2546 = vmatprep.subr.bf16.mxu1 %v3079_v49  ;;  %v3286_v48 = vcombine.low %v939_v59, %v943_v62  ;;  %v3151_v49 = vcombine.high %v803_v3, %v807_v6  ;;  %v911_v28 = vld [vmem:[#allocation14 + $0x638] sm:$0xff] }
 0x2d6   :  { %2587 = vmatprep.subr.bf16.mxu0 %v3207_v51  ;;  %v3279_v51 = vcombine.high %v931_v8, %v935_v10  ;;  %v3254_v4 = vcombine.low %v907_v27, %v911_v28  ;;  %v3847_v34 = vld [vmem:[%s4037_s8] sm:$0xff] }
 0x2d7   :  { %v973_v5 = vrot.slane %v3847_v34, %v3755_v57 }
 0x2d8   :  { %2547 = vmatpush1.bf16.msra.mxu1 %v3078_v15  ;;  %v3150_v15 = vcombine.low %v803_v3, %v807_v6 }
 0x2d9   :  { %2588 = vmatpush1.bf16.msra.mxu0 %v3206_v16  ;;  %2548 = vmatprep.subr.bf16.mxu1 %v3071_v17  ;;  %v3278_v16 = vcombine.low %v931_v8, %v935_v10  ;;  %v3143_v17 = vcombine.high %v795_v52, %v799_v53 }
 0x2da   :  { %2589 = vmatprep.subr.bf16.mxu0 %v3199_v18  ;;  %v3271_v18 = vcombine.high %v923_v11, %v927_v14 }
 0x2dc   :  { %2549 = vmatpush1.bf16.msra.mxu1 %v3070_v21  ;;  %v3142_v21 = vcombine.low %v795_v52, %v799_v53 }
 0x2dd   :  { %2590 = vmatpush1.bf16.msra.mxu0 %v3198_v22  ;;  %2550 = vmatprep.subr.bf16.mxu1 %v3063_v23  ;;  %v3270_v22 = vcombine.low %v923_v11, %v927_v14  ;;  %v3135_v23 = vcombine.high %v787_v7, %v791_v19 }
 0x2de   :  { %2591 = vmatprep.subr.bf16.mxu0 %v3191_v24  ;;  %v3263_v24 = vcombine.high %v915_v20, %v919_v9 }
 0x2e0   :  { %2551 = vmatpush1.bf16.msra.mxu1 %v3062_v29  ;;  %v3134_v29 = vcombine.low %v787_v7, %v791_v19 }
 0x2e1   :  { %2592 = vmatpush1.bf16.msra.mxu0 %v3190_v30  ;;  %2552 = vmatprep.subr.bf16.mxu1 %v3183_v31  ;;  %v3262_v30 = vcombine.low %v915_v20, %v919_v9  ;;  %v3127_v31 = vcombine.high %v779_v25, %v783_v26 }
 0x2e2   :  { %2593 = vmatprep.subr.bf16.mxu0 %v3311_v32  ;;  %v3255_v32 = vcombine.high %v907_v27, %v911_v28  ;;  %v3870_v28 = vld [vmem:[%s4038_s9] sm:$0xff]  ;;  %s3648_s9 = smov [#allocation17]  }
 0x2e3   :  { %s3007_s23 = sshll.u32 %s3648_s9, 4  ;;  %s3008_s23 = int_to_ptr.vmem [resolvable:$true] %s3007_s23 }
 0x2e4   :  { %2553 = vmatpush2.bf16.msra.mxu1 %v3182_v35  ;;  %v977_v35 = vrot.slane %v3847_v34, %v3761_v60  ;;  %s3597_s24 = scalar_lea.vmem %s3008_s23, 1024  ;;  %p3602_p4 = scmp.lt.s32.totalorder %s3008_s23, %s3008_s23 }
 0x2e5   :  { %2594 = vmatpush2.bf16.msra.mxu0 %v3310_v12  ;;  %2554 = vmatprep.subr.bf16.mxu1 %v3175_v36  ;;  %p3598_p3 = scmp.ne.s32.totalorder %s3008_s23, %s3597_s24  ;;  %p3603_p5 = scmp.lt.s32.totalorder %s3597_s24, %s3597_s24 }
 0x2e6   :  { %2595 = vmatprep.subr.bf16.mxu0 %v3303_v13 }
 0x2e7   :  { %p3604_p6 = por %p3603_p5, %p3602_p4 }
 0x2e8   :  { %2555 = vmatpush2.bf16.msra.mxu1 %v3174_v45 }
 0x2e9   :  { %2596 = vmatpush2.bf16.msra.mxu0 %v3302_v46  ;;  %2556 = vmatprep.subr.bf16.mxu1 %v3167_v50  ;;  %p3605_p7 = pnand %p3604_p6, %p3598_p3 }
 0x2ea   :  { %2597 = vmatprep.subr.bf16.mxu0 %v3295_v41 }
 0x2ec   :  { %2557 = vmatpush2.bf16.msra.mxu1 %v3166_v42 }
 0x2ed   :  { %2598 = vmatpush2.bf16.msra.mxu0 %v3294_v63  ;;  %2558 = vmatprep.subr.bf16.mxu1 %v3159_v0 }
 0x2ee   :  { %2599 = vmatprep.subr.bf16.mxu0 %v3287_v1 }
 0x2f0   :  { %2559 = vmatpush2.bf16.msra.mxu1 %v3158_v47 }
 0x2f1   :  { %2600 = vmatpush2.bf16.msra.mxu0 %v3286_v48  ;;  %2560 = vmatprep.subr.bf16.mxu1 %v3151_v49 }
 0x2f2   :  { %2601 = vmatprep.subr.bf16.mxu0 %v3279_v51 }
 0x2f4   :  { %2561 = vmatpush2.bf16.msra.mxu1 %v3150_v15 }
 0x2f5   :  { %2602 = vmatpush2.bf16.msra.mxu0 %v3278_v16  ;;  %2562 = vmatprep.subr.bf16.mxu1 %v3143_v17 }
 0x2f6   :  { %2603 = vmatprep.subr.bf16.mxu0 %v3271_v18 }
 0x2f8   :  { %2563 = vmatpush2.bf16.msra.mxu1 %v3142_v21 }
 0x2f9   :  { %2604 = vmatpush2.bf16.msra.mxu0 %v3270_v22  ;;  %2564 = vmatprep.subr.bf16.mxu1 %v3135_v23 }
 0x2fa   :  { %2605 = vmatprep.subr.bf16.mxu0 %v3263_v24 }
 0x2fc   :  { %2565 = vmatpush2.bf16.msra.mxu1 %v3134_v29  ;;  %v2775_v29 = vrot.slane %v3870_v28, %v3755_v57 }
 0x2fd   :  { %2606 = vmatpush2.bf16.msra.mxu0 %v3262_v30  ;;  %2566 = vmatprep.subr.bf16.mxu1 %v3127_v31  ;;  %v2779_v30 = vrot.slane %v3870_v28, %v3761_v60 }
 0x2fe   :  { %2607 = vmatprep.subr.bf16.mxu0 %v3255_v32 }
 0x300   :  { %2567 = vmatpush2.bf16.msra.mxu1 %v3126_v33 }
 0x301   :  { %2608 = vmatpush2.bf16.msra.mxu0 %v3254_v4 }
 0x303   :  { %2569 = vmatmul.mubr.bf16.vlgmr.msra.gmra.mxu1 %v3820_v43  ;;  %v2324_v12 = vpop.f32.mrf.mxu1  ;;  %v2365_v36 = vpop.f32.mrf.mxu0 }
 0x304   :  { %2610 = vmatmul.mubr.bf16.vlgmr.msra.gmra.mxu0 %v3822_v44  ;;  %v2325_v13 = vadd.f32 %v2324_v12, %v973_v5 }
 0x305   :  { %v2326_v37 = vpop.f32.mrf.mxu1  ;;  %v2367_v38 = vpop.f32.mrf.mxu0 }
 0x306   :  { %v3855_v39 = vadd.f32 %v2365_v36, %v2325_v13  ;;  %v2327_v40 = vadd.f32 %v2326_v37, %v977_v35  ;;  %v981_v36 = vrot.slane %v3847_v34, %v3758_v58  ;;  %v985_v13 = vrot.slane %v3847_v34, %v3764_v61 }
 0x307   :  { %v2328_v45 = vpop.f32.mrf.mxu1  ;;  %v2369_v46 = vpop.f32.mrf.mxu0 }
 0x308   :  { %v2618_v50 = vrot.slane %v3855_v39, 4  ;;  %v2674_v41 = vmul.f32 %v3855_v39, %v3855_v39  ;;  %v3860_v54 = vadd.f32 %v2367_v38, %v2327_v40 }
 0x309   :  { %v2329_v43 = vpop.f32.mrf.mxu1  ;;  %v2370_v55 = vpop.f32.mrf.mxu0 }
 0x30a   :  { %v2619_v59 = vadd.f32 %v2618_v50, %v3855_v39  ;;  %v2682_v44 = vrot.slane %v2674_v41, 4  ;;  %v2624_v62 = vrot.slane %v3860_v54, 4  ;;  %v2675_v42 = vmul.f32 %v3860_v54, %v3860_v54 }
 0x30c   :  { %v2620_v63 = vrot.slane %v2619_v59, 2  ;;  %v2683_v0 = vadd.f32 %v2682_v44, %v2674_v41  ;;  %v2625_v1 = vadd.f32 %v2624_v62, %v3860_v54  ;;  %v2688_v3 = vrot.slane %v2675_v42, 4 }
 0x30e   :  { %v2621_v6 = vadd.f32 %v2620_v63, %v2619_v59  ;;  %v2684_v8 = vrot.slane %v2683_v0, 2  ;;  %v2626_v10 = vrot.slane %v2625_v1, 2  ;;  %v2689_v47 = vadd.f32 %v2688_v3, %v2675_v42 }
 0x310   :  { %v2622_v48 = vrot.slane %v2621_v6, 1  ;;  %v2685_v49 = vadd.f32 %v2684_v8, %v2683_v0  ;;  %v2627_v51 = vadd.f32 %v2626_v10, %v2625_v1  ;;  %v2690_v52 = vrot.slane %v2689_v47, 2 }
 0x312   :  { %v2623_v53 = vadd.f32 %v2622_v48, %v2621_v6  ;;  %v2686_v11 = vrot.slane %v2685_v49, 1  ;;  %v2628_v14 = vrot.slane %v2627_v51, 1  ;;  %v2691_v15 = vadd.f32 %v2690_v52, %v2689_v47 }
 0x314   :  { %v2666_v16 = vmul.f32 0.125, %v2623_v53  ;;  %v2687_v17 = vadd.f32 %v2686_v11, %v2685_v49  ;;  %v2629_v18 = vadd.f32 %v2628_v14, %v2627_v51  ;;  %v2692_v7 = vrot.slane %v2691_v15, 1 }
 0x316   :  { %v2730_v19 = vmul.f32 0.125, %v2687_v17  ;;  %v2738_v20 = vmul.f32 %v2666_v16, %v2666_v16  ;;  %v2667_v9 = vmul.f32 0.125, %v2629_v18  ;;  %v2693_v21 = vadd.f32 %v2692_v7, %v2691_v15 }
 0x318   :  { %v2746_v22 = vsub.f32 %v2730_v19, %v2738_v20  ;;  %v2731_v23 = vmul.f32 0.125, %v2693_v21  ;;  %v2739_v24 = vmul.f32 %v2667_v9, %v2667_v9 }
 0x31a   :  { %v2754_v25 = vadd.f32 1e-05, %v2746_v22  ;;  %v2747_v26 = vsub.f32 %v2731_v23, %v2739_v24 }
 0x31c   :  { %3401 = vrsqrt.f32 %v2754_v25  ;;  %v2755_v27 = vadd.f32 1e-05, %v2747_v26 }
 0x31e   :  { %3403 = vrsqrt.f32 %v2755_v27 }
 0x329   :  { %v3402_v31 = vpop.eup %3401 }
 0x32a   :  { %v3876_v32 = vmul.f32 %v3402_v31, %v2775_v29 }
 0x32b   :  { %v3404_v33 = vpop.eup %3403 }
 0x32c   :  { %v3878_v4 = vmul.f32 %v3404_v33, %v2779_v30  ;;  %v3881_v5 = vmul.f32 %v3876_v32, %v2666_v16 }
 0x32e   :  { %v3884_v35 = vmul.f32 %v3878_v4, %v2667_v9 }
 0x330   :  { %v2837_v12 = vcombine.low %v3881_v5, %v3884_v35  ;;  %v2783_v35 = vrot.slane %v3870_v28, %v3758_v58 }
 0x343   :  { %v2406_v37 = vpop.f32.mrf.mxu1  ;;  %v2447_v38 = vpop.f32.mrf.mxu0 }
 0x344   :  { %v2407_v40 = vadd.f32 %v2406_v37, %v981_v36  ;;  %v2787_v36 = vrot.slane %v3870_v28, %v3764_v61 }
 0x345   :  { %v2408_v45 = vpop.f32.mrf.mxu1  ;;  %v2449_v46 = vpop.f32.mrf.mxu0 }
 0x346   :  { %v3892_v50 = vadd.f32 %v2447_v38, %v2407_v40  ;;  %v2409_v41 = vadd.f32 %v2408_v45, %v985_v13 }
 0x347   :  { %v2410_v43 = vpop.f32.mrf.mxu1  ;;  %v2451_v55 = vpop.f32.mrf.mxu0 }
 0x348   :  { %v2630_v59 = vrot.slane %v3892_v50, 4  ;;  %v2676_v44 = vmul.f32 %v3892_v50, %v3892_v50  ;;  %v3897_v62 = vadd.f32 %v2449_v46, %v2409_v41  ;;  %v3915_v43 = vrot.slane %v2837_v12, %v3799_v2 }
 0x349   :  { %v2411_v42 = vpop.f32.mrf.mxu1  ;;  %v2452_v63 = vpop.f32.mrf.mxu0 }
 0x34a   :  { %v2631_v0 = vadd.f32 %v2630_v59, %v3892_v50  ;;  %v2694_v1 = vrot.slane %v2676_v44, 4  ;;  %v2636_v3 = vrot.slane %v3897_v62, 4  ;;  %v2677_v6 = vmul.f32 %v3897_v62, %v3897_v62 }
 0x34b   :  { %v3926_v42 = vsub.s32 5, %v3752_v56 }
 0x34c   :  { %v2632_v8 = vrot.slane %v2631_v0, 2  ;;  %v2695_v10 = vadd.f32 %v2694_v1, %v2676_v44  ;;  %v2637_v47 = vadd.f32 %v2636_v3, %v3897_v62  ;;  %v2700_v48 = vrot.slane %v2677_v6, 4 }
 0x34d   :  { %v3923_v44 = vsub.s32 4, %v3752_v56 }
 0x34e   :  { %v2633_v49 = vadd.f32 %v2632_v8, %v2631_v0  ;;  %v2696_v51 = vrot.slane %v2695_v10, 2  ;;  %v2638_v52 = vrot.slane %v2637_v47, 2  ;;  %v2701_v53 = vadd.f32 %v2700_v48, %v2677_v6 }
 0x34f   :  { %v989_v63 = vrot.slane %v3847_v34, %v3923_v44  ;;  %v993_v0 = vrot.slane %v3847_v34, %v3926_v42 }
 0x350   :  { %v2634_v11 = vrot.slane %v2633_v49, 1  ;;  %v2697_v14 = vadd.f32 %v2696_v51, %v2695_v10  ;;  %v2639_v15 = vadd.f32 %v2638_v52, %v2637_v47  ;;  %v2702_v16 = vrot.slane %v2701_v53, 2 }
 0x352   :  { %v2635_v17 = vadd.f32 %v2634_v11, %v2633_v49  ;;  %v2698_v18 = vrot.slane %v2697_v14, 1  ;;  %v2640_v7 = vrot.slane %v2639_v15, 1  ;;  %v2703_v19 = vadd.f32 %v2702_v16, %v2701_v53 }
 0x354   :  { %v2668_v20 = vmul.f32 0.125, %v2635_v17  ;;  %v2699_v9 = vadd.f32 %v2698_v18, %v2697_v14  ;;  %v2641_v21 = vadd.f32 %v2640_v7, %v2639_v15  ;;  %v2704_v22 = vrot.slane %v2703_v19, 1 }
 0x356   :  { %v2732_v23 = vmul.f32 0.125, %v2699_v9  ;;  %v2740_v24 = vmul.f32 %v2668_v20, %v2668_v20  ;;  %v2669_v25 = vmul.f32 0.125, %v2641_v21  ;;  %v2705_v26 = vadd.f32 %v2704_v22, %v2703_v19 }
 0x358   :  { %v2748_v27 = vsub.f32 %v2732_v23, %v2740_v24  ;;  %v2733_v29 = vmul.f32 0.125, %v2705_v26  ;;  %v2741_v30 = vmul.f32 %v2669_v25, %v2669_v25 }
 0x35a   :  { %v2756_v31 = vadd.f32 1e-05, %v2748_v27  ;;  %v2749_v33 = vsub.f32 %v2733_v29, %v2741_v30 }
 0x35c   :  { %3405 = vrsqrt.f32 %v2756_v31  ;;  %v2757_v5 = vadd.f32 1e-05, %v2749_v33 }
 0x35e   :  { %3407 = vrsqrt.f32 %v2757_v5 }
 0x369   :  { %v3406_v13 = vpop.eup %3405 }
 0x36a   :  { %v3908_v37 = vmul.f32 %v3406_v13, %v2783_v35 }
 0x36b   :  { %v3408_v38 = vpop.eup %3407 }
 0x36c   :  { %v3910_v40 = vmul.f32 %v3408_v38, %v2787_v36  ;;  %v2823_v45 = vmul.f32 %v3908_v37, %v2668_v20 }
 0x36e   :  { %v2824_v46 = vmul.f32 %v3910_v40, %v2669_v25 }
 0x370   :  { %v2838_v41 = vcombine.low %v2823_v45, %v2824_v46 }
 0x372   :  { %v3918_v55 = vrot.slane %v2838_v41, %v3799_v2 }
 0x374   :  { %v2869_v59 = vcombine.low %v3915_v43, %v3918_v55 }
 0x383   :  { %v2488_v12 = vpop.f32.mrf.mxu1 }
 0x384   :  { %v2489_v1 = vadd.f32 %v2488_v12, %v989_v63  ;;  %v2529_v3 = vpop.f32.mrf.mxu0 }
 0x385   :  { %v2490_v6 = vpop.f32.mrf.mxu1 }
 0x386   :  { %v3932_v8 = vadd.f32 %v2529_v3, %v2489_v1  ;;  %v2491_v10 = vadd.f32 %v2490_v6, %v993_v0  ;;  %v2531_v47 = vpop.f32.mrf.mxu0 }
 0x387   :  { %v2492_v48 = vpop.f32.mrf.mxu1 }
 0x388   :  { %v2642_v49 = vrot.slane %v3932_v8, 4  ;;  %v2678_v51 = vmul.f32 %v3932_v8, %v3932_v8  ;;  %v3937_v52 = vadd.f32 %v2531_v47, %v2491_v10  ;;  %v2533_v53 = vpop.f32.mrf.mxu0  ;;  %v2791_v47 = vrot.slane %v3870_v28, %v3923_v44 }
 0x389   :  { %v2493_v11 = vpop.f32.mrf.mxu1  ;;  %v2795_v48 = vrot.slane %v3870_v28, %v3926_v42 }
 0x38a   :  { %v2643_v14 = vadd.f32 %v2642_v49, %v3932_v8  ;;  %v2706_v15 = vrot.slane %v2678_v51, 4  ;;  %v2648_v16 = vrot.slane %v3937_v52, 4  ;;  %v2679_v17 = vmul.f32 %v3937_v52, %v3937_v52  ;;  %v2534_v18 = vpop.f32.mrf.mxu0 }
 0x38b   :  { %v3964_v18 = vsub.s32 7, %v3752_v56 }
 0x38c   :  { %v2644_v7 = vrot.slane %v2643_v14, 2  ;;  %v2707_v19 = vadd.f32 %v2706_v15, %v2678_v51  ;;  %v2649_v20 = vadd.f32 %v2648_v16, %v3937_v52  ;;  %v2712_v9 = vrot.slane %v2679_v17, 4 }
 0x38e   :  { %v2645_v21 = vadd.f32 %v2644_v7, %v2643_v14  ;;  %v2708_v22 = vrot.slane %v2707_v19, 2  ;;  %v2650_v23 = vrot.slane %v2649_v20, 2  ;;  %v2713_v24 = vadd.f32 %v2712_v9, %v2679_v17 }
 0x38f   :  { %v3961_v17 = vsub.s32 6, %v3752_v56 }
 0x390   :  { %v2646_v25 = vrot.slane %v2645_v21, 1  ;;  %v2709_v26 = vadd.f32 %v2708_v22, %v2707_v19  ;;  %v2651_v27 = vadd.f32 %v2650_v23, %v2649_v20  ;;  %v2714_v29 = vrot.slane %v2713_v24, 2 }
 0x391   :  { %v997_v7 = vrot.slane %v3847_v34, %v3961_v17  ;;  %v1001_v19 = vrot.slane %v3847_v34, %v3964_v18 }
 0x392   :  { %v2647_v30 = vadd.f32 %v2646_v25, %v2645_v21  ;;  %v2710_v31 = vrot.slane %v2709_v26, 1  ;;  %v2652_v33 = vrot.slane %v2651_v27, 1  ;;  %v2715_v5 = vadd.f32 %v2714_v29, %v2713_v24 }
 0x394   :  { %v2670_v35 = vmul.f32 0.125, %v2647_v30  ;;  %v2711_v36 = vadd.f32 %v2710_v31, %v2709_v26  ;;  %v2653_v13 = vadd.f32 %v2652_v33, %v2651_v27  ;;  %v2716_v38 = vrot.slane %v2715_v5, 1 }
 0x396   :  { %v2734_v45 = vmul.f32 0.125, %v2711_v36  ;;  %v2742_v46 = vmul.f32 %v2670_v35, %v2670_v35  ;;  %v2671_v41 = vmul.f32 0.125, %v2653_v13  ;;  %v2717_v63 = vadd.f32 %v2716_v38, %v2715_v5 }
 0x398   :  { %v2750_v0 = vsub.f32 %v2734_v45, %v2742_v46  ;;  %v2735_v12 = vmul.f32 0.125, %v2717_v63  ;;  %v2743_v1 = vmul.f32 %v2671_v41, %v2671_v41 }
 0x39a   :  { %v2758_v3 = vadd.f32 1e-05, %v2750_v0  ;;  %v2751_v6 = vsub.f32 %v2735_v12, %v2743_v1 }
 0x39c   :  { %3409 = vrsqrt.f32 %v2758_v3  ;;  %v2759_v10 = vadd.f32 1e-05, %v2751_v6 }
 0x39e   :  { %3411 = vrsqrt.f32 %v2759_v10 }
 0x3a9   :  { %v3410_v49 = vpop.eup %3409 }
 0x3aa   :  { %v3948_v51 = vmul.f32 %v3410_v49, %v2791_v47 }
 0x3ab   :  { %v3412_v53 = vpop.eup %3411 }
 0x3ac   :  { %v3950_v11 = vmul.f32 %v3412_v53, %v2795_v48  ;;  %v3953_v14 = vmul.f32 %v3948_v51, %v2670_v35 }
 0x3ae   :  { %v3956_v15 = vmul.f32 %v3950_v11, %v2671_v41 }
 0x3b0   :  { %v2839_v16 = vcombine.low %v3953_v14, %v3956_v15  ;;  %v2903_v14 = vrot.slane %v3910_v40, %v3755_v57 }
 0x3c3   :  { %v2570_v20 = vpop.f32.mrf.mxu1 }
 0x3c4   :  { %v2571_v9 = vadd.f32 %v2570_v20, %v997_v7  ;;  %v2611_v21 = vpop.f32.mrf.mxu0 }
 0x3c5   :  { %v2572_v22 = vpop.f32.mrf.mxu1 }
 0x3c6   :  { %v3970_v23 = vadd.f32 %v2611_v21, %v2571_v9  ;;  %v2573_v24 = vadd.f32 %v2572_v22, %v1001_v19  ;;  %v2613_v25 = vpop.f32.mrf.mxu0 }
 0x3c7   :  { %v2574_v26 = vpop.f32.mrf.mxu1 }
 0x3c8   :  { %v2654_v27 = vrot.slane %v3970_v23, 4  ;;  %v2680_v56 = vmul.f32 %v3970_v23, %v3970_v23  ;;  %v3975_v29 = vadd.f32 %v2613_v25, %v2573_v24  ;;  %v2615_v30 = vpop.f32.mrf.mxu0 }
 0x3c9   :  { %v2575_v31 = vpop.f32.mrf.mxu1 }
 0x3ca   :  { %v2655_v34 = vadd.f32 %v2654_v27, %v3970_v23  ;;  %v2718_v33 = vrot.slane %v2680_v56, 4  ;;  %v2660_v5 = vrot.slane %v3975_v29, 4  ;;  %v2681_v35 = vmul.f32 %v3975_v29, %v3975_v29  ;;  %v2616_v36 = vpop.f32.mrf.mxu0 }
 0x3cc   :  { %v2656_v13 = vrot.slane %v2655_v34, 2  ;;  %v2719_v38 = vadd.f32 %v2718_v33, %v2680_v56  ;;  %v2661_v45 = vadd.f32 %v2660_v5, %v3975_v29  ;;  %v2724_v46 = vrot.slane %v2681_v35, 4 }
 0x3cd   :  { %v2799_v33 = vrot.slane %v3870_v28, %v3961_v17  ;;  %v2803_v5 = vrot.slane %v3870_v28, %v3964_v18  ;;  %v2895_v28 = vrot.slane %v3878_v4, %v3755_v57 }
 0x3ce   :  { %v2657_v41 = vadd.f32 %v2656_v13, %v2655_v34  ;;  %v2720_v63 = vrot.slane %v2719_v38, 2  ;;  %v2662_v0 = vrot.slane %v2661_v45, 2  ;;  %v2725_v12 = vadd.f32 %v2724_v46, %v2681_v35 }
 0x3cf   :  { %v2921_v55 = vmul.f32 %v2895_v28, %v3860_v54 }
 0x3d0   :  { %v2658_v1 = vrot.slane %v2657_v41, 1  ;;  %v2721_v3 = vadd.f32 %v2720_v63, %v2719_v38  ;;  %v2663_v6 = vadd.f32 %v2662_v0, %v2661_v45  ;;  %v2726_v10 = vrot.slane %v2725_v12, 2 }
 0x3d1   :  { %v2861_v63 = vrot.slane %v2839_v16, %v3799_v2  ;;  %v2907_v16 = vrot.slane %v3948_v51, %v3755_v57 }
 0x3d2   :  { %v2659_v47 = vadd.f32 %v2658_v1, %v2657_v41  ;;  %v2722_v48 = vrot.slane %v2721_v3, 1  ;;  %v2664_v49 = vrot.slane %v2663_v6, 1  ;;  %v2727_v53 = vadd.f32 %v2726_v10, %v2725_v12  ;;  %v2820_v10 = vld [vmem:[#allocation16] sm:$0xff] }
 0x3d3   :  { %v2891_v1 = vrot.slane %v3876_v32, %v3755_v57  ;;  %v2911_v32 = vrot.slane %v3950_v11, %v3755_v57  ;;  %v2924_v51 = vmul.f32 %v2907_v16, %v3932_v8 }
 0x3d4   :  { %v2672_v7 = vmul.f32 0.125, %v2659_v47  ;;  %v2723_v19 = vadd.f32 %v2722_v48, %v2721_v3  ;;  %v2665_v20 = vadd.f32 %v2664_v49, %v2663_v6  ;;  %v2728_v9 = vrot.slane %v2727_v53, 1 }
 0x3d5   :  { %v2899_v3 = vrot.slane %v3908_v37, %v3755_v57  ;;  %v2877_v6 = vrot.slane %v2869_v59, %v3799_v2  ;;  %v2920_v43 = vmul.f32 %v2891_v1, %v3855_v39  ;;  %v2925_v48 = vmul.f32 %v2911_v32, %v3937_v52 }
 0x3d6   :  { %v2736_v21 = vmul.f32 0.125, %v2723_v19  ;;  %v2744_v22 = vmul.f32 %v2672_v7, %v2672_v7  ;;  %v2673_v24 = vmul.f32 0.125, %v2665_v20  ;;  %v2729_v25 = vadd.f32 %v2728_v9, %v2727_v53 }
 0x3d7   :  { %v2922_v40 = vmul.f32 %v2899_v3, %v3892_v50 }
 0x3d8   :  { %v2752_v26 = vsub.f32 %v2736_v21, %v2744_v22  ;;  %v2737_v27 = vmul.f32 0.125, %v2729_v25  ;;  %v2745_v56 = vmul.f32 %v2673_v24, %v2673_v24 }
 0x3da   :  { %v2760_v30 = vadd.f32 1e-05, %v2752_v26  ;;  %v2753_v31 = vsub.f32 %v2737_v27, %v2745_v56 }
 0x3dc   :  { %3413 = vrsqrt.f32 %v2760_v30  ;;  %v2761_v34 = vadd.f32 1e-05, %v2753_v31 }
 0x3de   :  { %3415 = vrsqrt.f32 %v2761_v34 }
 0x3e9   :  { %v3414_v35 = vpop.eup %3413 }
 0x3ea   :  { %v2818_v36 = vmul.f32 %v3414_v35, %v2799_v33 }
 0x3eb   :  { %v3416_v13 = vpop.eup %3415 }
 0x3ec   :  { %v2819_v38 = vmul.f32 %v3416_v13, %v2803_v5  ;;  %v2827_v45 = vmul.f32 %v2818_v36, %v2672_v7  ;;  %v2915_v4 = vrot.slane %v2818_v36, %v3755_v57 }
 0x3ee   :  { %v2828_v46 = vmul.f32 %v2819_v38, %v2673_v24  ;;  %v2919_v37 = vrot.slane %v2819_v38, %v3755_v57  ;;  %v2926_v11 = vmul.f32 %v2915_v4, %v3970_v23 }
 0x3f0   :  { %v2840_v41 = vcombine.low %v2827_v45, %v2828_v46  ;;  %v2927_v49 = vmul.f32 %v2919_v37, %v3975_v29 }
 0x3f2   :  { %v2868_v0 = vrot.slane %v2840_v41, %v3799_v2 }
 0x3f4   :  { %v2870_v12 = vcombine.low %v2861_v63, %v2868_v0 }
 0x3f6   :  { %v2884_v15 = vrot.slane %v2870_v12, %v3799_v2  ;;  %v2923_v2 = vmul.f32 %v2903_v14, %v3897_v62 }
 0x3f8   :  { %v2885_v47 = vcombine.low %v2877_v6, %v2884_v15 }
 0x3fa   :  { %v2887_v59 = vsub.f32 %v2820_v10, %v2885_v47 }
 0x3fc   :  { %v2960_v53 = vrot.slane %v2887_v59, %v3964_v18  ;;  %v2932_v7 = vrot.slane %v2887_v59, %v3755_v57  ;;  %v2936_v39 = vrot.slane %v2887_v59, %v3761_v60  ;;  %v2940_v54 = vrot.slane %v2887_v59, %v3758_v58 }
 0x3fd   :  { %v2944_v50 = vrot.slane %v2887_v59, %v3764_v61  ;;  %v2948_v62 = vrot.slane %v2887_v59, %v3923_v44  ;;  %v2952_v8 = vrot.slane %v2887_v59, %v3926_v42  ;;  %v2956_v52 = vrot.slane %v2887_v59, %v3961_v17 }
 0x3fe   :  { %v2976_v19 = vadd.f32 %v2960_v53, %v2927_v49  ;;  %v2969_v23 = vadd.f32 %v2932_v7, %v2920_v43  ;;  %v2970_v20 = vadd.f32 %v2936_v39, %v2921_v55  ;;  %v2971_v29 = vadd.f32 %v2940_v54, %v2922_v40 }
 0x3ff   :  { %v2972_v9 = vadd.f32 %v2944_v50, %v2923_v2  ;;  %v2973_v18 = vadd.f32 %v2948_v62, %v2924_v51  ;;  %v2974_v21 = vadd.f32 %v2952_v8, %v2925_v48  ;;  %v2975_v57 = vadd.f32 %v2956_v52, %v2926_v11 }
 0x400   :  { %v2984_v60 = vmul.f32 0.01, %v2976_v19  ;;  %v2977_v58 = vmul.f32 0.01, %v2969_v23  ;;  %v2978_v22 = vmul.f32 0.01, %v2970_v20 }
 0x401   :  { %v2979_v61 = vmul.f32 0.01, %v2971_v29  ;;  %v2980_v24 = vmul.f32 0.01, %v2972_v9  ;;  %v2981_v44 = vmul.f32 0.01, %v2973_v18 }
 0x402   :  { %v2992_v25 = vmax.f32 %v2976_v19, %v2984_v60  ;;  %v2982_v42 = vmul.f32 0.01, %v2974_v21  ;;  %v2983_v26 = vmul.f32 0.01, %v2975_v57  ;;  %v2985_v17 = vmax.f32 %v2969_v23, %v2977_v58 }
 0x403   :  { %v2986_v27 = vmax.f32 %v2970_v20, %v2978_v22  ;;  %v2987_v56 = vmax.f32 %v2971_v29, %v2979_v61  ;;  %v2988_v30 = vmax.f32 %v2972_v9, %v2980_v24  ;;  %v2989_v31 = vmax.f32 %v2973_v18, %v2981_v44 }
 0x404   :  { %3000 = vst [vmem:[#allocation17 + $0x38] sm:$0xff] %v2992_v25  ;;  %v2990_v34 = vmax.f32 %v2974_v21, %v2982_v42  ;;  %v2991_v33 = vmax.f32 %v2975_v57, %v2983_v26  ;;  %2993 = vst [vmem:[#allocation17] sm:$0xff] %v2985_v17 }
 0x405   :  { %2994 = vst [vmem:[#allocation17 + $0x8] sm:$0xff] %v2986_v27  ;;  %2995 = vst [vmem:[#allocation17 + $0x10] sm:$0xff] %v2987_v56 }
 0x406   :  { %2996 = vst [vmem:[#allocation17 + $0x18] sm:$0xff] %v2988_v30  ;;  %2997 = vst [vmem:[#allocation17 + $0x20] sm:$0xff] %v2989_v31 }
 0x407   :  { %2998 = vst [vmem:[#allocation17 + $0x28] sm:$0xff] %v2990_v34  ;;  %2999 = vst [vmem:[#allocation17 + $0x30] sm:$0xff] %v2991_v33 }
 0x408   :  { %3608 = shalt.err (!%p3605_p7)
}
 0x409   :  { %3010 = dma.vmem_to_hbm [thread:$0]  %s3008_s23, 1024, %s4040_s11, [#allocation4]  }
 0x40a   :  { %3627 = dma.done.wait [#allocation4], 1024  }
 0x40b   :  { %3628 = vsyncadd [#allocation4], 4294966272 }
 0x40c   :  { %3014 = vsyncpa [#allocation3], 1 }
 0x40d   :  { %3015 = vsyncpa [#allocation6], 1 }
 0x40e   :  { %3016 = vsyncpa [#allocation9], 1 }
 0x40f   :  { %3017 = vsyncpa [#allocation12], 1 }
 0x410   :  { %3018 = vsyncpa [#allocation15], 1 }
 0x411   :  { %3019 = vsyncpa [#allocation4], 1 }

</bundles_post_ra>
